<compile_context>
chip_gen: v7x
topology: tpu7x:2x2x1
jax: 0.10.0
libtpu: 0.0.40
codegen_flags: <defaults>
</compile_context>

<pallas_src>
import jax
import jax.numpy as jnp
from jax.experimental import pallas as pl
from jax.experimental.pallas import tpu as pltpu

D_IN = 768
D_HID = 512


def _round_up(x, m):
    return (x + m - 1) // m * m


def critic_kernel(x_ref, w1_ref, b1_ref, w2_ref, b2_ref, o_ref):
    # x_ref : (bm, 768)   f32   streamed batch tile (cast to bf16 in-kernel)
    # w1_ref: (768, 512)  bf16  resident first-layer weight
    # b1_ref: (1, 512)    f32
    # w2_ref: (1, 512)    f32   second-layer weight as a lane row
    # b2_ref: (1, 1)      f32
    # o_ref : (1, 1, bm)  f32   lane-dense output slab
    x_bf = x_ref[...].astype(jnp.bfloat16)            # VPU cast, hidden under MXU/DMA
    h = jnp.dot(x_bf, w1_ref[...], preferred_element_type=jnp.float32)
    h = jnp.maximum(h + b1_ref[...], 0.0)              # bias + ReLU in f32 on the VPU
    # Dropout(p) in eval mode is the identity.
    # TODO(synk): training-mode dropout would need pltpu.prng_seed/prng_random_bits here.
    # Second Linear (512 -> 1): VPU multiply + cross-lane (XLU) reduction; an N=1 MXU
    # matmul would waste the systolic array.
    col = jnp.sum(h * w2_ref[...], axis=1)              # (bm,)
    bm = o_ref.shape[-1]
    o_ref[...] = (col.reshape(1, 1, bm) + b2_ref[...]).astype(o_ref.dtype)


def critic_forward(state, w1, b1, w2, b2, *, block_m=1024):
    """state: [B, 768] -> value tensor with torch `.squeeze()` semantics."""
    B = state.shape[0]
    assert state.shape[1] == D_IN, state.shape

    # ---- pick the batch tile -------------------------------------------------
    # bm is a multiple of 128 (lane-dense output, whole-vreg relayout), capped at 2048.
    bm = max(128, min(int(block_m), 2048))
    bm = _round_up(bm, 128)
    bm = min(bm, _round_up(B, 128))        # single tile whenever the padded batch fits
    B_pad = _round_up(B, bm)
    grid_m = B_pad // bm

    x = state.astype(jnp.float32)
    if B_pad != B:
        x = jnp.pad(x, ((0, B_pad - B), (0, 0)))

    w1_bf = w1.astype(jnp.bfloat16)                      # resident bf16 MXU weight
    b1_2d = b1.reshape(1, D_HID).astype(jnp.float32)
    w2_row = w2.reshape(1, D_HID).astype(jnp.float32)
    b2_2d = b2.reshape(1, 1).astype(jnp.float32)

    cost = pl.CostEstimate(
        flops=2 * B_pad * D_IN * D_HID + 2 * B_pad * D_HID,
        transcendentals=0,
        bytes_accessed=B_pad * D_IN * 4            # f32 activations read
        + D_IN * D_HID * 2                         # bf16 W1
        + (2 * D_HID + 1) * 4                      # b1, w2 row, b2
        + B_pad * 4,                               # f32 output
    )

    out = pl.pallas_call(
        critic_kernel,
        out_shape=jax.ShapeDtypeStruct((grid_m, 1, bm), jnp.float32),
        grid_spec=pltpu.PrefetchScalarGridSpec(
            num_scalar_prefetch=0,
            grid=(grid_m,),
            in_specs=[
                pl.BlockSpec((bm, D_IN), lambda i: (i, 0)),      # streamed f32 x tile
                pl.BlockSpec((D_IN, D_HID), lambda i: (0, 0)),   # W1 (resident, bf16)
                pl.BlockSpec((1, D_HID), lambda i: (0, 0)),      # b1
                pl.BlockSpec((1, D_HID), lambda i: (0, 0)),      # w2 row
                pl.BlockSpec((1, 1), lambda i: (0, 0)),          # b2
            ],
            out_specs=pl.BlockSpec((1, 1, bm), lambda i: (i, 0, 0)),
        ),
        compiler_params=pltpu.CompilerParams(
            dimension_semantics=("parallel",),
            # Explicit scoped-VMEM limit: covers bm=2048 f32 tiles double-buffered
            # (~22 MiB) and clears v5e's 16 MiB default without over-asking.
            vmem_limit_bytes=32 * 1024 * 1024,
        ),
        cost_estimate=cost,
    )(x, w1_bf, b1_2d, w2_row, b2_2d)

    values = out.reshape(B_pad)[:B]
    # PyTorch `.squeeze()`: [B, 1] -> [B]  (scalar for B == 1)
    return jnp.squeeze(values)


def init_params(key):
    """Deterministic synthetic parameters with nn.Linear-like init (uniform +/- 1/sqrt(fan_in))."""
    k1, k2, k3, k4 = jax.random.split(key, 4)
    lim1 = 1.0 / (D_IN ** 0.5)
    lim2 = 1.0 / (D_HID ** 0.5)
    w1 = jax.random.uniform(k1, (D_IN, D_HID), jnp.float32, -lim1, lim1)   # [in, out]
    b1 = jax.random.uniform(k2, (D_HID,), jnp.float32, -lim1, lim1)
    w2 = jax.random.uniform(k3, (D_HID, 1), jnp.float32, -lim2, lim2)      # [in, out]
    b2 = jax.random.uniform(k4, (1,), jnp.float32, -lim2, lim2)
    return w1, b1, w2, b2


if __name__ == "__main__":
    key = jax.random.PRNGKey(0)
    kp, kx1, kx2 = jax.random.split(key, 3)
    w1, b1, w2, b2 = init_params(kp)

    def ref_fn(x):
        # eval-mode dropout == identity; full-f32 reference
        return jnp.squeeze(jnp.maximum(x @ w1 + b1, 0.0) @ w2 + b2)

    # Case 1: small batch -> single 128-row tile (grid = 1), padded rows sliced off.
    B1 = 8
    s1 = jax.random.normal(kx1, (B1, D_IN), jnp.float32)
    v1 = jax.block_until_ready(critic_forward(s1, w1, b1, w2, b2))
    assert v1.shape == (B1,), v1.shape
    assert jnp.allclose(v1, ref_fn(s1), atol=3e-2, rtol=3e-2), "mismatch vs reference (B=8)"

    # Case 2: multi-tile batch (grid > 1, batch padding, lane-dense output path).
    B2 = 200
    s2 = jax.random.normal(kx2, (B2, D_IN), jnp.float32)
    v2 = jax.block_until_ready(critic_forward(s2, w1, b1, w2, b2, block_m=128))
    assert v2.shape == (B2,), v2.shape
    assert jnp.allclose(v2, ref_fn(s2), atol=3e-2, rtol=3e-2), "mismatch vs reference (B=200)"

    print("KERNEL_OK")
</pallas_src>

<mosaic_0001>
module attributes {stable_mosaic.version = 11 : i64} {
  func.func @critic_kernel(%arg0: i32, %arg1: memref<128x768xf32, #tpu.memory_space<vmem>>, %arg2: memref<768x512xbf16, #tpu.memory_space<vmem>>, %arg3: memref<1x512xf32, #tpu.memory_space<vmem>>, %arg4: memref<1x512xf32, #tpu.memory_space<vmem>>, %arg5: memref<1x1xf32, #tpu.memory_space<vmem>>, %arg6: memref<1x1x128xf32, #tpu.memory_space<vmem>>) attributes {dimension_semantics = [#tpu.dimension_semantics<parallel>], iteration_bounds = array<i64: 1>, scalar_prefetch = 0 : i64, scratch_operands = 0 : i64, tpu.core_type = #tpu.core_type<tc>, window_params = [{transform_indices = @transform_0, window_bounds = array<i64: 128, 768>}, {pipeline_mode = #tpu.pipeline_mode<synchronous>, transform_indices = @transform_1, window_bounds = array<i64: 768, 512>}, {pipeline_mode = #tpu.pipeline_mode<synchronous>, transform_indices = @transform_2, window_bounds = array<i64: 1, 512>}, {pipeline_mode = #tpu.pipeline_mode<synchronous>, transform_indices = @transform_3, window_bounds = array<i64: 1, 512>}, {pipeline_mode = #tpu.pipeline_mode<synchronous>, transform_indices = @transform_4, window_bounds = array<i64: 1, 1>}, {transform_indices = @transform_5, window_bounds = array<i64: 1, 1, 128>}]} {
    %c0 = arith.constant 0 : index
    %c0_0 = arith.constant 0 : index
    %0 = vector.load %arg1[%c0, %c0_0] : memref<128x768xf32, #tpu.memory_space<vmem>>, vector<128x768xf32>
    %1 = arith.truncf %0 : vector<128x768xf32> to vector<128x768xbf16>
    %c0_1 = arith.constant 0 : index
    %c0_2 = arith.constant 0 : index
    %2 = vector.load %arg2[%c0_1, %c0_2] : memref<768x512xbf16, #tpu.memory_space<vmem>>, vector<768x512xbf16>
    %cst = arith.constant dense<0.000000e+00> : vector<128x512xf32>
    %3 = tpu.matmul %1, %2, %cst {dimension_numbers = #tpu.dot_dimension_numbers<[1], [0], [0], [1], [0, 0, 1, 1], [], []>} : vector<128x768xbf16>, vector<768x512xbf16>, vector<128x512xf32> -> vector<128x512xf32>
    %c0_3 = arith.constant 0 : index
    %c0_4 = arith.constant 0 : index
    %4 = vector.load %arg3[%c0_3, %c0_4] : memref<1x512xf32, #tpu.memory_space<vmem>>, vector<1x512xf32>
    %5 = vector.broadcast %4 : vector<1x512xf32> to vector<128x512xf32>
    %6 = arith.addf %3, %5 : vector<128x512xf32>
    %cst_5 = arith.constant 0.000000e+00 : f32
    %7 = vector.broadcast %cst_5 : f32 to vector<128x512xf32>
    %8 = arith.maximumf %6, %7 : vector<128x512xf32>
    %c0_6 = arith.constant 0 : index
    %c0_7 = arith.constant 0 : index
    %9 = vector.load %arg4[%c0_6, %c0_7] : memref<1x512xf32, #tpu.memory_space<vmem>>, vector<1x512xf32>
    %10 = vector.broadcast %9 : vector<1x512xf32> to vector<128x512xf32>
    %11 = arith.mulf %8, %10 : vector<128x512xf32>
    %cst_8 = arith.constant dense<0.000000e+00> : vector<128xf32>
    %12 = vector.multi_reduction <add>, %11, %cst_8 [1] : vector<128x512xf32> to vector<128xf32>
    %13 = vector.shape_cast %12 : vector<128xf32> to vector<1x1x128xf32>
    %c0_9 = arith.constant 0 : index
    %c0_10 = arith.constant 0 : index
    %14 = vector.load %arg5[%c0_9, %c0_10] : memref<1x1xf32, #tpu.memory_space<vmem>>, vector<1x1xf32>
    %15 = vector.shape_cast %14 : vector<1x1xf32> to vector<1x1x1xf32>
    %16 = vector.broadcast %15 : vector<1x1x1xf32> to vector<1x1x128xf32>
    %17 = arith.addf %13, %16 : vector<1x1x128xf32>
    %c0_11 = arith.constant 0 : index
    %c0_12 = arith.constant 0 : index
    %c0_13 = arith.constant 0 : index
    %18 = vector.load %arg6[%c0_11, %c0_12, %c0_13] : memref<1x1x128xf32, #tpu.memory_space<vmem>>, vector<1x1x128xf32>
    tpu.vector_store %arg6[%c0_11, %c0_12, %c0_13], %17 {strides = array<i32>} : memref<1x1x128xf32, #tpu.memory_space<vmem>>, vector<1x1x128xf32>,
    return
  }
  func.func @transform_0(%arg0: i32) -> (i32, i32) {
    %c0_i32 = arith.constant 0 : i32
    %c0_i32_0 = arith.constant 0 : i32
    return %arg0, %c0_i32 : i32, i32
  }
  func.func @transform_1(%arg0: i32) -> (i32, i32) {
    %c0_i32 = arith.constant 0 : i32
    %c0_i32_0 = arith.constant 0 : i32
    %c0_i32_1 = arith.constant 0 : i32
    return %c0_i32, %c0_i32_0 : i32, i32
  }
  func.func @transform_2(%arg0: i32) -> (i32, i32) {
    %c0_i32 = arith.constant 0 : i32
    %c0_i32_0 = arith.constant 0 : i32
    %c0_i32_1 = arith.constant 0 : i32
    return %c0_i32, %c0_i32_0 : i32, i32
  }
  func.func @transform_3(%arg0: i32) -> (i32, i32) {
    %c0_i32 = arith.constant 0 : i32
    %c0_i32_0 = arith.constant 0 : i32
    %c0_i32_1 = arith.constant 0 : i32
    return %c0_i32, %c0_i32_0 : i32, i32
  }
  func.func @transform_4(%arg0: i32) -> (i32, i32) {
    %c0_i32 = arith.constant 0 : i32
    %c0_i32_0 = arith.constant 0 : i32
    %c0_i32_1 = arith.constant 0 : i32
    return %c0_i32, %c0_i32_0 : i32, i32
  }
  func.func @transform_5(%arg0: i32) -> (i32, i32, i32) {
    %c0_i32 = arith.constant 0 : i32
    %c0_i32_0 = arith.constant 0 : i32
    %c0_i32_1 = arith.constant 0 : i32
    return %arg0, %c0_i32, %c0_i32_0 : i32, i32, i32
  }
}

</mosaic_0001>

<bundles_post_ra>
// kernel: tpu_custom_call.1
= control target key start
LH: loop header
LB: loop body
LE: loop exit
PB: predicated region body
PF: predicated region fallthrough
CT: control target
= control target key end

     0   :  { %s3497_s0 = inlined_call_operand.hbm [shape: f32[128,768], index: 0, kind: input, shape index: {}]   ;;  %s3498_s1 = inlined_call_operand.hbm [shape: bf16[768,512], index: 1, kind: input, shape index: {}]   ;;  %s3499_s2 = inlined_call_operand.vmem [shape: f32[1,512], index: 2, kind: input, shape index: {}]   ;;  %s3500_s3 = inlined_call_operand.vmem [shape: f32[1,512], index: 3, kind: input, shape index: {}]   ;;  %s3501_s4 = inlined_call_operand.<no memory space> [shape: f32[1,1], index: 4, kind: input, shape index: {}]   ;;  %s3502_s5 = inlined_call_operand.hbm [shape: f32[1,1,128], index: 5, kind: output, shape index: {}]  }
   0x1   :  { %v10_v0 = vstv %s3501_s4 }
   0x2   :  { %11 = vst [vmem:[#allocation2] sm:$0x1] %v10_v0 }
   0x3   :  { %12 = vsyncpa [#allocation4], 0 }
   0x4   :  { %13 = vsyncpa [#allocation7], 0 }
   0x5   :  { %14 = vsyncpa [#allocation5], 0  ;;  %s3202_s20 = smov [#allocation3]   ;;  %s3130_s24 = scalar_lea.hbm %s3497_s0, 12288 }
   0x6   :  { %s20_s21 = sshll.u32 %s3202_s20, 4  ;;  %p3131_p0 = scmp.ne.s32.totalorder %s3497_s0, %s3130_s24  ;;  %s21_s21 = int_to_ptr.vmem [resolvable:$true] %s20_s21 }
   0x7   :  { %p3134_p1 = scmp.lt.u32.totalorder %s3130_s24, %s3497_s0 }
   0x9   :  { %p3136_p2 = pnand %p3134_p1, %p3131_p0 }
   0xb   :  { %3139 = shalt.err (!%p3136_p2)
}
   0xc   :  { %s3140_s4 = scalar_lea.vmem %s21_s21, 12288  ;;  %p3145_p4 = scmp.lt.s32.totalorder %s21_s21, %s21_s21 }
   0xd   :  { %p3141_p3 = scmp.ne.s32.totalorder %s21_s21, %s3140_s4  ;;  %p3146_p5 = scmp.lt.s32.totalorder %s3140_s4, %s3140_s4 }
   0xf   :  { %p3147_p6 = por %p3146_p5, %p3145_p4 }
  0x11   :  { %p3148_p7 = pnand %p3147_p6, %p3141_p3 }
  0x13   :  { %3151 = shalt.err (!%p3148_p7)
}
  0x14   :  { %s3203_s29 = smov 768   ;;  %s3204_s30 = smov 48  }
  0x15   :  { %26 = dma.hbm_to_vmem [thread:$0]  %s3497_s0, 12288, %s21_s21, [#allocation4], %s3203_s29, %s3203_s29, %s3204_s30  }
  0x16   :  { %s3205_s8 = smov [#allocation6]   ;;  %s3152_s12 = scalar_lea.hbm %s3498_s1, 24576 }
  0x17   :  { %s32_s9 = sshll.u32 %s3205_s8, 4  ;;  %p3153_p8 = scmp.ne.s32.totalorder %s3498_s1, %s3152_s12  ;;  %s33_s9 = int_to_ptr.vmem [resolvable:$true] %s32_s9 }
  0x18   :  { %p3156_p9 = scmp.lt.u32.totalorder %s3152_s12, %s3498_s1 }
  0x1a   :  { %p3158_p10 = pnand %p3156_p9, %p3153_p8 }
  0x1c   :  { %3161 = shalt.err (!%p3158_p10)
}
  0x1d   :  { %s3162_s17 = scalar_lea.vmem %s33_s9, 24576  ;;  %p3167_p12 = scmp.lt.s32.totalorder %s33_s9, %s33_s9 }
  0x1e   :  { %p3163_p11 = scmp.ne.s32.totalorder %s33_s9, %s3162_s17  ;;  %p3168_p13 = scmp.lt.s32.totalorder %s3162_s17, %s3162_s17 }
  0x20   :  { %p3169_p0 = por %p3168_p13, %p3167_p12 }
  0x22   :  { %p3170_p1 = pnand %p3169_p0, %p3163_p11 }
  0x24   :  { %3173 = shalt.err (!%p3170_p1)
}
  0x25   :  { %s3206_s0 = smov 256   ;;  %s3207_s18 = smov 16  }
  0x26   :  { %38 = dma.hbm_to_vmem [thread:$0]  %s3498_s1, 24576, %s33_s9, [#allocation7], %s3206_s0, %s3206_s0, %s3207_s18  }
  0x27   :  { %3196 = dma.done.wait [#allocation4], 12288  }
  0x28   :  { %3197 = vsyncadd [#allocation4], 4294955008 }
  0x29   :  { %3198 = dma.done.wait [#allocation7], 24576  }
  0x2a   :  { %3199 = vsyncadd [#allocation7], 4294942720  ;;  %v2842_v1 = vld [vmem:[#allocation6 + $0x4] ss:$16 sps:$4 sm:$0xff]   ;;  %v2844_v2 = vld [vmem:[#allocation6 + $0xc] ss:$16 sps:$4 sm:$0xff]  }
  0x2b   :  { %1369 = vmatprep.subr.bf16.mxu0 %v2842_v1  ;;  %v2846_v3 = vld [vmem:[#allocation6] ss:$16 sps:$4 sm:$0xff]   ;;  %v2847_v4 = vld [vmem:[#allocation6 + $0x8] ss:$16 sps:$4 sm:$0xff]   ;;  %1708 = vmatprep.subr.bf16.mxu1 %v2844_v2  ;;  %v2848_v5 = vld [vmem:[#allocation6 + $0x24] ss:$16 sps:$4 sm:$0xff]  }
  0x2c   :  { %1370 = vmatpush1.bf16.msra.mxu0 %v2846_v3  ;;  %1709 = vmatpush1.bf16.msra.mxu1 %v2847_v4  ;;  %v2850_v6 = vld [vmem:[#allocation6 + $0x2c] ss:$16 sps:$4 sm:$0xff]   ;;  %v2852_v7 = vld [vmem:[#allocation6 + $0x20] ss:$16 sps:$4 sm:$0xff]   ;;  %v2853_v8 = vld [vmem:[#allocation6 + $0x28] ss:$16 sps:$4 sm:$0xff]  }
  0x2d   :  { %1371 = vmatprep.subr.bf16.mxu0 %v2848_v5  ;;  %1710 = vmatprep.subr.bf16.mxu1 %v2850_v6  ;;  %v2854_v9 = vld [vmem:[#allocation6 + $0x44] ss:$16 sps:$4 sm:$0xff]   ;;  %v2856_v10 = vld [vmem:[#allocation6 + $0x4c] ss:$16 sps:$4 sm:$0xff]   ;;  %v2858_v11 = vld [vmem:[#allocation6 + $0x40] ss:$16 sps:$4 sm:$0xff]  }
  0x2e   :  { %v2859_v12 = vld [vmem:[#allocation6 + $0x48] ss:$16 sps:$4 sm:$0xff]   ;;  %v2860_v13 = vld [vmem:[#allocation6 + $0x64] ss:$16 sps:$4 sm:$0xff]   ;;  %v2862_v14 = vld [vmem:[#allocation6 + $0x6c] ss:$16 sps:$4 sm:$0xff]  }
  0x2f   :  { %v2864_v15 = vld [vmem:[#allocation6 + $0x60] ss:$16 sps:$4 sm:$0xff]   ;;  %v2865_v16 = vld [vmem:[#allocation6 + $0x68] ss:$16 sps:$4 sm:$0xff]   ;;  %v2866_v17 = vld [vmem:[#allocation6 + $0x84] ss:$16 sps:$4 sm:$0xff]  }
  0x30   :  { %1372 = vmatpush1.bf16.msra.mxu0 %v2852_v7  ;;  %1711 = vmatpush1.bf16.msra.mxu1 %v2853_v8  ;;  %v2868_v18 = vld [vmem:[#allocation6 + $0x8c] ss:$16 sps:$4 sm:$0xff]   ;;  %v2870_v19 = vld [vmem:[#allocation6 + $0x80] ss:$16 sps:$4 sm:$0xff]   ;;  %v2871_v20 = vld [vmem:[#allocation6 + $0x88] ss:$16 sps:$4 sm:$0xff]  }
  0x31   :  { %1373 = vmatprep.subr.bf16.mxu0 %v2854_v9  ;;  %1712 = vmatprep.subr.bf16.mxu1 %v2856_v10  ;;  %v2872_v21 = vld [vmem:[#allocation6 + $0xa4] ss:$16 sps:$4 sm:$0xff]   ;;  %v2874_v22 = vld [vmem:[#allocation6 + $0xac] ss:$16 sps:$4 sm:$0xff]   ;;  %v2876_v23 = vld [vmem:[#allocation6 + $0xa0] ss:$16 sps:$4 sm:$0xff]  }
  0x32   :  { %v2877_v24 = vld [vmem:[#allocation6 + $0xa8] ss:$16 sps:$4 sm:$0xff]   ;;  %v2878_v25 = vld [vmem:[#allocation6 + $0xc4] ss:$16 sps:$4 sm:$0xff]   ;;  %v2880_v26 = vld [vmem:[#allocation6 + $0xcc] ss:$16 sps:$4 sm:$0xff]  }
  0x33   :  { %v2882_v27 = vld [vmem:[#allocation6 + $0xc0] ss:$16 sps:$4 sm:$0xff]   ;;  %v2883_v28 = vld [vmem:[#allocation6 + $0xc8] ss:$16 sps:$4 sm:$0xff]   ;;  %v2884_v29 = vld [vmem:[#allocation6 + $0xe4] ss:$16 sps:$4 sm:$0xff]  }
  0x34   :  { %1374 = vmatpush1.bf16.msra.mxu0 %v2858_v11  ;;  %1713 = vmatpush1.bf16.msra.mxu1 %v2859_v12  ;;  %v2886_v30 = vld [vmem:[#allocation6 + $0xec] ss:$16 sps:$4 sm:$0xff]   ;;  %v2888_v31 = vld [vmem:[#allocation6 + $0xe0] ss:$16 sps:$4 sm:$0xff]   ;;  %v2889_v32 = vld [vmem:[#allocation6 + $0xe8] ss:$16 sps:$4 sm:$0xff]  }
  0x35   :  { %1375 = vmatprep.subr.bf16.mxu0 %v2860_v13  ;;  %1714 = vmatprep.subr.bf16.mxu1 %v2862_v14  ;;  %v2890_v33 = vld [vmem:[#allocation6 + $0x104] ss:$16 sps:$4 sm:$0xff]   ;;  %v2892_v34 = vld [vmem:[#allocation6 + $0x10c] ss:$16 sps:$4 sm:$0xff]   ;;  %v2894_v35 = vld [vmem:[#allocation6 + $0x100] ss:$16 sps:$4 sm:$0xff]  }
  0x36   :  { %v2895_v36 = vld [vmem:[#allocation6 + $0x108] ss:$16 sps:$4 sm:$0xff]   ;;  %v2896_v37 = vld [vmem:[#allocation6 + $0x124] ss:$16 sps:$4 sm:$0xff]   ;;  %v2898_v38 = vld [vmem:[#allocation6 + $0x12c] ss:$16 sps:$4 sm:$0xff]  }
  0x37   :  { %v2900_v39 = vld [vmem:[#allocation6 + $0x120] ss:$16 sps:$4 sm:$0xff]   ;;  %v2901_v40 = vld [vmem:[#allocation6 + $0x128] ss:$16 sps:$4 sm:$0xff]   ;;  %v2902_v41 = vld [vmem:[#allocation6 + $0x144] ss:$16 sps:$4 sm:$0xff]  }
  0x38   :  { %1376 = vmatpush1.bf16.msra.mxu0 %v2864_v15  ;;  %1715 = vmatpush1.bf16.msra.mxu1 %v2865_v16  ;;  %v2904_v42 = vld [vmem:[#allocation6 + $0x14c] ss:$16 sps:$4 sm:$0xff]   ;;  %v2906_v43 = vld [vmem:[#allocation6 + $0x140] ss:$16 sps:$4 sm:$0xff]   ;;  %v2907_v44 = vld [vmem:[#allocation6 + $0x148] ss:$16 sps:$4 sm:$0xff]  }
  0x39   :  { %1377 = vmatprep.subr.bf16.mxu0 %v2866_v17  ;;  %1716 = vmatprep.subr.bf16.mxu1 %v2868_v18  ;;  %v2908_v45 = vld [vmem:[#allocation6 + $0x164] ss:$16 sps:$4 sm:$0xff]   ;;  %v2910_v46 = vld [vmem:[#allocation6 + $0x16c] ss:$16 sps:$4 sm:$0xff]   ;;  %v2912_v48 = vld [vmem:[#allocation6 + $0x160] ss:$16 sps:$4 sm:$0xff]  }
  0x3a   :  { %v52_v47 = vld [vmem:[#allocation3 + $0x8] sm:$0xff]  ;;  %v58_v50 = vld [vmem:[#allocation3 + $0x38] sm:$0xff]  ;;  %v2914_v51 = vld [vmem:[#allocation6 + $0x184] ss:$16 sps:$4 sm:$0xff]   ;;  %vm2330_vm0 = vcmask 130112   ;;  %vm2337_vm1 = vcmask 195712  }
  0x3b   :  { %v2913_v49 = vld [vmem:[#allocation6 + $0x168] ss:$16 sps:$4 sm:$0xff]   ;;  %v148_v52 = vpack.c.bf16 %v58_v50, %v52_v47  ;;  %v2916_v53 = vld [vmem:[#allocation6 + $0x18c] ss:$16 sps:$4 sm:$0xff]   ;;  %v2918_v54 = vld [vmem:[#allocation6 + $0x180] ss:$16 sps:$4 sm:$0xff]  }
  0x3c   :  { %1378 = vmatpush1.bf16.msra.mxu0 %v2870_v19  ;;  %1717 = vmatpush1.bf16.msra.mxu1 %v2871_v20  ;;  %v2919_v55 = vld [vmem:[#allocation6 + $0x188] ss:$16 sps:$4 sm:$0xff]   ;;  %v2920_v56 = vld [vmem:[#allocation6 + $0x1a4] ss:$16 sps:$4 sm:$0xff]   ;;  %v2922_v57 = vld [vmem:[#allocation6 + $0x1ac] ss:$16 sps:$4 sm:$0xff]  }
  0x3d   :  { %1379 = vmatprep.subr.bf16.mxu0 %v2872_v21  ;;  %1718 = vmatprep.subr.bf16.mxu1 %v2874_v22  ;;  %v2924_v58 = vld [vmem:[#allocation6 + $0x1a0] ss:$16 sps:$4 sm:$0xff]   ;;  %v2925_v59 = vld [vmem:[#allocation6 + $0x1a8] ss:$16 sps:$4 sm:$0xff]   ;;  %v2926_v60 = vld [vmem:[#allocation6 + $0x1c4] ss:$16 sps:$4 sm:$0xff]  }
  0x3e   :  { %1401 = vmatprep.mubr.bf16.mxu0 %v148_v52  ;;  %1740 = vmatprep.mubr.bf16.mxu1 %v148_v52  ;;  %v2928_v61 = vld [vmem:[#allocation6 + $0x1cc] ss:$16 sps:$4 sm:$0xff]   ;;  %v2930_v62 = vld [vmem:[#allocation6 + $0x1c0] ss:$16 sps:$4 sm:$0xff]   ;;  %v2931_v63 = vld [vmem:[#allocation6 + $0x1c8] ss:$16 sps:$4 sm:$0xff]  }
  0x3f   :  { %v2932_v0 = vld [vmem:[#allocation6 + $0x1e4] ss:$16 sps:$4 sm:$0xff]   ;;  %v2934_v1 = vld [vmem:[#allocation6 + $0x1ec] ss:$16 sps:$4 sm:$0xff]   ;;  %v2936_v2 = vld [vmem:[#allocation6 + $0x1e0] ss:$16 sps:$4 sm:$0xff]  }
  0x40   :  { %1380 = vmatpush1.bf16.msra.mxu0 %v2876_v23  ;;  %1719 = vmatpush1.bf16.msra.mxu1 %v2877_v24  ;;  %v2937_v3 = vld [vmem:[#allocation6 + $0x1e8] ss:$16 sps:$4 sm:$0xff]   ;;  %v51_v4 = vld [vmem:[#allocation3] sm:$0xff]  ;;  %v57_v5 = vld [vmem:[#allocation3 + $0x30] sm:$0xff]  ;;  %vm2344_vm2 = vcmask 261312   ;;  %vm2351_vm3 = vcmask 326912  }
  0x41   :  { %1381 = vmatprep.subr.bf16.mxu0 %v2878_v25  ;;  %1720 = vmatprep.subr.bf16.mxu1 %v2880_v26  ;;  %v2940_v6 = vld [vmem:[#allocation6 + $0x204] ss:$16 sps:$4 sm:$0xff]   ;;  %v2943_v7 = vld [vmem:[#allocation6 + $0x20c] ss:$16 sps:$4 sm:$0xff]   ;;  %v2938_v8 = vld [vmem:[#allocation6 + $0x200] ss:$16 sps:$4 sm:$0xff]   ;;  %v147_v9 = vpack.c.bf16 %v57_v5, %v51_v4 }
  0x42   :  { %v2941_v10 = vld [vmem:[#allocation6 + $0x208] ss:$16 sps:$4 sm:$0xff]   ;;  %v2946_v13 = vld [vmem:[#allocation6 + $0x224] ss:$16 sps:$4 sm:$0xff]   ;;  %v2949_v14 = vld [vmem:[#allocation6 + $0x22c] ss:$16 sps:$4 sm:$0xff]  }
  0x43   :  { %v64_v11 = vld [vmem:[#allocation3 + $0x68] sm:$0xff]  ;;  %v70_v12 = vld [vmem:[#allocation3 + $0x98] sm:$0xff]  ;;  %v2944_v15 = vld [vmem:[#allocation6 + $0x220] ss:$16 sps:$4 sm:$0xff]   ;;  %vm2358_vm4 = vcmask 392512   ;;  %vm2365_vm5 = vcmask 458112  }
  0x44   :  { %1382 = vmatpush1.bf16.msra.mxu0 %v2882_v27  ;;  %1721 = vmatpush1.bf16.msra.mxu1 %v2883_v28  ;;  %v154_v16 = vpack.c.bf16 %v70_v12, %v64_v11  ;;  %v2947_v17 = vld [vmem:[#allocation6 + $0x228] ss:$16 sps:$4 sm:$0xff]   ;;  %v63_v18 = vld [vmem:[#allocation3 + $0x60] sm:$0xff]  ;;  %v69_v19 = vld [vmem:[#allocation3 + $0x90] sm:$0xff]  ;;  %vm2372_vm6 = vcmask 523712   ;;  %vm2379_vm7 = vcmask 589312  }
  0x45   :  { %1383 = vmatprep.subr.bf16.mxu0 %v2884_v29  ;;  %1722 = vmatprep.subr.bf16.mxu1 %v2886_v30  ;;  %v2952_v20 = vld [vmem:[#allocation6 + $0x244] ss:$16 sps:$4 sm:$0xff]   ;;  %v2955_v21 = vld [vmem:[#allocation6 + $0x24c] ss:$16 sps:$4 sm:$0xff]   ;;  %v2950_v22 = vld [vmem:[#allocation6 + $0x240] ss:$16 sps:$4 sm:$0xff]   ;;  %v153_v24 = vpack.c.bf16 %v69_v19, %v63_v18 }
  0x46   :  { %v2953_v23 = vld [vmem:[#allocation6 + $0x248] ss:$16 sps:$4 sm:$0xff]   ;;  %v2958_v27 = vld [vmem:[#allocation6 + $0x264] ss:$16 sps:$4 sm:$0xff]   ;;  %v2961_v28 = vld [vmem:[#allocation6 + $0x26c] ss:$16 sps:$4 sm:$0xff]  }
  0x47   :  { %v76_v25 = vld [vmem:[#allocation3 + $0xc8] sm:$0xff]  ;;  %v82_v26 = vld [vmem:[#allocation3 + $0xf8] sm:$0xff]  ;;  %v2956_v30 = vld [vmem:[#allocation6 + $0x260] ss:$16 sps:$4 sm:$0xff]   ;;  %vm2386_vm8 = vcmask 654912   ;;  %vm2393_vm9 = vcmask 720512  }
  0x48   :  { %1384 = vmatpush1.bf16.msra.mxu0 %v2888_v31  ;;  %1723 = vmatpush1.bf16.msra.mxu1 %v2889_v32  ;;  %v160_v29 = vpack.c.bf16 %v82_v26, %v76_v25  ;;  %v2959_v31 = vld [vmem:[#allocation6 + $0x268] ss:$16 sps:$4 sm:$0xff]   ;;  %v75_v32 = vld [vmem:[#allocation3 + $0xc0] sm:$0xff]  ;;  %v93_v47 = vld [vmem:[#allocation3 + $0x150] sm:$0xff]  ;;  %vm2400_vm10 = vcmask 786112   ;;  %vm2407_vm11 = vcmask 851712  }
  0x49   :  { %1385 = vmatprep.subr.bf16.mxu0 %v2890_v33  ;;  %1724 = vmatprep.subr.bf16.mxu1 %v2892_v34  ;;  %v81_v33 = vld [vmem:[#allocation3 + $0xf0] sm:$0xff]  ;;  %v100_v52 = vld [vmem:[#allocation3 + $0x188] sm:$0xff]  ;;  %v130_v18 = vld [vmem:[#allocation3 + $0x278] sm:$0xff]  ;;  %vm2414_vm12 = vcmask 917312   ;;  %vm2421_vm13 = vcmask 982912   ;;  %vm2428_vm14 = vcmask 1048512  }
  0x4a   :  { %v2964_v34 = vld [vmem:[#allocation6 + $0x284] ss:$16 sps:$4 sm:$0xff]   ;;  %v2974_v50 = vld [vmem:[#allocation6 + $0x2c0] ss:$16 sps:$4 sm:$0xff]   ;;  %v2989_v4 = vld [vmem:[#allocation6 + $0x308] ss:$16 sps:$4 sm:$0xff]  }
  0x4b   :  { %v2994_v5 = vld [vmem:[#allocation6 + $0x324] ss:$16 sps:$4 sm:$0xff]  }
  0x4c   :  { %1386 = vmatpush1.bf16.msra.mxu0 %v2894_v35  ;;  %1725 = vmatpush1.bf16.msra.mxu1 %v2895_v36  ;;  %v2967_v35 = vld [vmem:[#allocation6 + $0x28c] ss:$16 sps:$4 sm:$0xff]   ;;  %v2962_v36 = vld [vmem:[#allocation6 + $0x280] ss:$16 sps:$4 sm:$0xff]   ;;  %v3000_v12 = vld [vmem:[#allocation6 + $0x344] ss:$16 sps:$4 sm:$0xff]  }
  0x4d   :  { %1387 = vmatprep.subr.bf16.mxu0 %v2896_v37  ;;  %1726 = vmatprep.subr.bf16.mxu1 %v2898_v38  ;;  %v2965_v37 = vld [vmem:[#allocation6 + $0x288] ss:$16 sps:$4 sm:$0xff]   ;;  %v159_v38 = vpack.c.bf16 %v81_v33, %v75_v32  ;;  %v117_v11 = vld [vmem:[#allocation3 + $0x210] sm:$0xff] }
  0x4e   :  { %v3006_v19 = vld [vmem:[#allocation6 + $0x364] ss:$16 sps:$4 sm:$0xff]   ;;  %v142_v32 = vld [vmem:[#allocation3 + $0x2d8] sm:$0xff] }
  0x4f   :  { %v129_v25 = vld [vmem:[#allocation3 + $0x270] sm:$0xff] }
  0x50   :  { %1388 = vmatpush1.bf16.msra.mxu0 %v2900_v39  ;;  %1727 = vmatpush1.bf16.msra.mxu1 %v2901_v40  ;;  %v88_v39 = vld [vmem:[#allocation3 + $0x128] sm:$0xff]  ;;  %v94_v40 = vld [vmem:[#allocation3 + $0x158] sm:$0xff]  ;;  %v3012_v26 = vld [vmem:[#allocation6 + $0x384] ss:$16 sps:$4 sm:$0xff]  }
  0x51   :  { %1389 = vmatprep.subr.bf16.mxu0 %v2902_v41  ;;  %1728 = vmatprep.subr.bf16.mxu1 %v2904_v42  ;;  %v2970_v41 = vld [vmem:[#allocation6 + $0x2a4] ss:$16 sps:$4 sm:$0xff]   ;;  %v2973_v42 = vld [vmem:[#allocation6 + $0x2ac] ss:$16 sps:$4 sm:$0xff]  }
  0x52   :  { %v3018_v33 = vld [vmem:[#allocation6 + $0x3a4] ss:$16 sps:$4 sm:$0xff]  }
  0x54   :  { %1390 = vmatpush1.bf16.msra.mxu0 %v2906_v43  ;;  %1729 = vmatpush1.bf16.msra.mxu1 %v2907_v44  ;;  %v2968_v43 = vld [vmem:[#allocation6 + $0x2a0] ss:$16 sps:$4 sm:$0xff]   ;;  %v166_v44 = vpack.c.bf16 %v94_v40, %v88_v39  ;;  %v3024_v40 = vld [vmem:[#allocation6 + $0x3c4] ss:$16 sps:$4 sm:$0xff]  }
  0x55   :  { %1391 = vmatprep.subr.bf16.mxu0 %v2908_v45  ;;  %1730 = vmatprep.subr.bf16.mxu1 %v2910_v46  ;;  %v2971_v45 = vld [vmem:[#allocation6 + $0x2a8] ss:$16 sps:$4 sm:$0xff]   ;;  %v87_v46 = vld [vmem:[#allocation3 + $0x120] sm:$0xff]  ;;  %v141_v39 = vld [vmem:[#allocation3 + $0x2d0] sm:$0xff] }
  0x58   :  { %1392 = vmatpush1.bf16.msra.mxu0 %v2912_v48  ;;  %1731 = vmatpush1.bf16.msra.mxu1 %v2913_v49  ;;  %v2976_v48 = vld [vmem:[#allocation6 + $0x2c4] ss:$16 sps:$4 sm:$0xff]   ;;  %v2979_v49 = vld [vmem:[#allocation6 + $0x2cc] ss:$16 sps:$4 sm:$0xff]  }
  0x59   :  { %1393 = vmatprep.subr.bf16.mxu0 %v2914_v51  ;;  %1732 = vmatprep.subr.bf16.mxu1 %v2916_v53  ;;  %v165_v51 = vpack.c.bf16 %v93_v47, %v87_v46  ;;  %v106_v53 = vld [vmem:[#allocation3 + $0x1b8] sm:$0xff]  ;;  %v60_v46 = vld [vmem:[#allocation3 + $0x48] sm:$0xff]  ;;  %v3030_v47 = vld [vmem:[#allocation6 + $0x3e4] ss:$16 sps:$4 sm:$0xff]  }
  0x5c   :  { %1394 = vmatpush1.bf16.msra.mxu0 %v2918_v54  ;;  %1733 = vmatpush1.bf16.msra.mxu1 %v2919_v55  ;;  %v2977_v54 = vld [vmem:[#allocation6 + $0x2c8] ss:$16 sps:$4 sm:$0xff]   ;;  %v2982_v55 = vld [vmem:[#allocation6 + $0x2e4] ss:$16 sps:$4 sm:$0xff]  }
  0x5d   :  { %1395 = vmatprep.subr.bf16.mxu0 %v2920_v56  ;;  %1734 = vmatprep.subr.bf16.mxu1 %v2922_v57  ;;  %v2985_v56 = vld [vmem:[#allocation6 + $0x2ec] ss:$16 sps:$4 sm:$0xff]   ;;  %v2980_v57 = vld [vmem:[#allocation6 + $0x2e0] ss:$16 sps:$4 sm:$0xff]  }
  0x60   :  { %1396 = vmatpush1.bf16.msra.mxu0 %v2924_v58  ;;  %1735 = vmatpush1.bf16.msra.mxu1 %v2925_v59  ;;  %v2983_v58 = vld [vmem:[#allocation6 + $0x2e8] ss:$16 sps:$4 sm:$0xff]   ;;  %v172_v59 = vpack.c.bf16 %v106_v53, %v100_v52  ;;  %v53_v52 = vld [vmem:[#allocation3 + $0x10] sm:$0xff]  ;;  %v59_v53 = vld [vmem:[#allocation3 + $0x40] sm:$0xff] }
  0x61   :  { %1397 = vmatprep.subr.bf16.mxu0 %v2926_v60  ;;  %1736 = vmatprep.subr.bf16.mxu1 %v2928_v61  ;;  %v99_v60 = vld [vmem:[#allocation3 + $0x180] sm:$0xff]  ;;  %v105_v61 = vld [vmem:[#allocation3 + $0x1b0] sm:$0xff] }
  0x64   :  { %1398 = vmatpush1.bf16.msra.mxu0 %v2930_v62  ;;  %1737 = vmatpush1.bf16.msra.mxu1 %v2931_v63  ;;  %v2988_v62 = vld [vmem:[#allocation6 + $0x304] ss:$16 sps:$4 sm:$0xff]   ;;  %v2991_v63 = vld [vmem:[#allocation6 + $0x30c] ss:$16 sps:$4 sm:$0xff]  }
  0x65   :  { %1399 = vmatprep.subr.bf16.mxu0 %v2932_v0  ;;  %1738 = vmatprep.subr.bf16.mxu1 %v2934_v1  ;;  %v171_v0 = vpack.c.bf16 %v105_v61, %v99_v60  ;;  %v112_v1 = vld [vmem:[#allocation3 + $0x1e8] sm:$0xff]  ;;  %v3042_v61 = vld [vmem:[#allocation6 + $0x424] ss:$16 sps:$4 sm:$0xff]  }
  0x66   :  { %v3037_v60 = vld [vmem:[#allocation6 + $0x408] ss:$16 sps:$4 sm:$0xff]  }
  0x68   :  { %1400 = vmatpush1.bf16.msra.mxu0 %v2936_v2  ;;  %1739 = vmatpush1.bf16.msra.mxu1 %v2937_v3  ;;  %v118_v2 = vld [vmem:[#allocation3 + $0x218] sm:$0xff]  ;;  %v2986_v3 = vld [vmem:[#allocation6 + $0x300] ss:$16 sps:$4 sm:$0xff]  }
  0x69   :  { %1482 = vmatprep.subr.bf16.mxu0 %v2940_v6  ;;  %1821 = vmatprep.subr.bf16.mxu1 %v2943_v7  ;;  %v2997_v6 = vld [vmem:[#allocation6 + $0x32c] ss:$16 sps:$4 sm:$0xff]   ;;  %v2992_v7 = vld [vmem:[#allocation6 + $0x320] ss:$16 sps:$4 sm:$0xff]  }
  0x6b   :  { %1402 = vmatmul.mubr.bf16.vlgmr.msra.gmra.mrb[0].mxu0 %v147_v9  ;;  %1741 = vmatmul.mubr.bf16.vlgmr.msra.gmra.mrb[0].mxu1 %v147_v9  ;;  %v178_v9 = vpack.c.bf16 %v118_v2, %v112_v1  ;;  %v65_v2 = vld [vmem:[#allocation3 + $0x70] sm:$0xff] }
  0x6c   :  { %1483 = vmatpush1.bf16.msra.mxu0 %v2938_v8  ;;  %1822 = vmatpush1.bf16.msra.mxu1 %v2941_v10  ;;  %v2995_v8 = vld [vmem:[#allocation6 + $0x328] ss:$16 sps:$4 sm:$0xff]   ;;  %v111_v10 = vld [vmem:[#allocation3 + $0x1e0] sm:$0xff] }
  0x6d   :  { %1484 = vmatprep.subr.bf16.mxu0 %v2946_v13  ;;  %1823 = vmatprep.subr.bf16.mxu1 %v2949_v14  ;;  %v3003_v13 = vld [vmem:[#allocation6 + $0x34c] ss:$16 sps:$4 sm:$0xff]   ;;  %v2998_v14 = vld [vmem:[#allocation6 + $0x340] ss:$16 sps:$4 sm:$0xff]  }
  0x6e   :  { %1411 = vmatprep.mubr.bf16.mxu0 %v154_v16  ;;  %1750 = vmatprep.mubr.bf16.mxu1 %v154_v16  ;;  %v3001_v16 = vld [vmem:[#allocation6 + $0x348] ss:$16 sps:$4 sm:$0xff]  }
  0x70   :  { %1485 = vmatpush1.bf16.msra.mxu0 %v2944_v15  ;;  %1824 = vmatpush1.bf16.msra.mxu1 %v2947_v17  ;;  %v177_v15 = vpack.c.bf16 %v117_v11, %v111_v10  ;;  %v124_v17 = vld [vmem:[#allocation3 + $0x248] sm:$0xff]  ;;  %v3054_v11 = vld [vmem:[#allocation6 + $0x464] ss:$16 sps:$4 sm:$0xff]  }
  0x71   :  { %1486 = vmatprep.subr.bf16.mxu0 %v2952_v20  ;;  %1825 = vmatprep.subr.bf16.mxu1 %v2955_v21  ;;  %v3009_v20 = vld [vmem:[#allocation6 + $0x36c] ss:$16 sps:$4 sm:$0xff]   ;;  %v3004_v21 = vld [vmem:[#allocation6 + $0x360] ss:$16 sps:$4 sm:$0xff]   ;;  %v3049_v10 = vld [vmem:[#allocation6 + $0x448] ss:$16 sps:$4 sm:$0xff]  }
  0x73   :  { %1412 = vmatmul.mubr.bf16.gmra.mrb[4].mxu0 %v153_v24  ;;  %1751 = vmatmul.mubr.bf16.gmra.mrb[4].mxu1 %v153_v24  ;;  %v123_v24 = vld [vmem:[#allocation3 + $0x240] sm:$0xff] }
  0x74   :  { %1487 = vmatpush1.bf16.msra.mxu0 %v2950_v22  ;;  %1826 = vmatpush1.bf16.msra.mxu1 %v2953_v23  ;;  %v184_v22 = vpack.c.bf16 %v130_v18, %v124_v17  ;;  %v3007_v23 = vld [vmem:[#allocation6 + $0x368] ss:$16 sps:$4 sm:$0xff]   ;;  %v83_v17 = vld [vmem:[#allocation3 + $0x100] sm:$0xff] }
  0x75   :  { %1488 = vmatprep.subr.bf16.mxu0 %v2958_v27  ;;  %1827 = vmatprep.subr.bf16.mxu1 %v2961_v28  ;;  %v3015_v27 = vld [vmem:[#allocation6 + $0x38c] ss:$16 sps:$4 sm:$0xff]   ;;  %v3010_v28 = vld [vmem:[#allocation6 + $0x380] ss:$16 sps:$4 sm:$0xff]   ;;  %v3060_v18 = vld [vmem:[#allocation6 + $0x484] ss:$16 sps:$4 sm:$0xff]  }
  0x76   :  { %1421 = vmatprep.mubr.bf16.mxu0 %v160_v29  ;;  %1760 = vmatprep.mubr.bf16.mxu1 %v160_v29  ;;  %v3013_v29 = vld [vmem:[#allocation6 + $0x388] ss:$16 sps:$4 sm:$0xff]  }
  0x78   :  { %1489 = vmatpush1.bf16.msra.mxu0 %v2956_v30  ;;  %1828 = vmatpush1.bf16.msra.mxu1 %v2959_v31  ;;  %v183_v30 = vpack.c.bf16 %v129_v25, %v123_v24  ;;  %v136_v31 = vld [vmem:[#allocation3 + $0x2a8] sm:$0xff]  ;;  %v3066_v25 = vld [vmem:[#allocation6 + $0x4a4] ss:$16 sps:$4 sm:$0xff]  }
  0x79   :  { %1490 = vmatprep.subr.bf16.mxu0 %v2964_v34  ;;  %1829 = vmatprep.subr.bf16.mxu1 %v2967_v35  ;;  %v3021_v34 = vld [vmem:[#allocation6 + $0x3ac] ss:$16 sps:$4 sm:$0xff]   ;;  %v190_v35 = vpack.c.bf16 %v142_v32, %v136_v31  ;;  %v95_v31 = vld [vmem:[#allocation3 + $0x160] sm:$0xff] }
  0x7a   :  { %v96_v24 = vld [vmem:[#allocation3 + $0x168] sm:$0xff]  ;;  %v3072_v32 = vld [vmem:[#allocation6 + $0x4c4] ss:$16 sps:$4 sm:$0xff]  }
  0x7b   :  { %1422 = vmatmul.mubr.bf16.gmra.mrb[8].mxu0 %v159_v38  ;;  %1761 = vmatmul.mubr.bf16.gmra.mrb[8].mxu1 %v159_v38  ;;  %v135_v38 = vld [vmem:[#allocation3 + $0x2a0] sm:$0xff] }
  0x7c   :  { %1491 = vmatpush1.bf16.msra.mxu0 %v2962_v36  ;;  %1830 = vmatpush1.bf16.msra.mxu1 %v2965_v37  ;;  %v3016_v36 = vld [vmem:[#allocation6 + $0x3a0] ss:$16 sps:$4 sm:$0xff]   ;;  %v3019_v37 = vld [vmem:[#allocation6 + $0x3a8] ss:$16 sps:$4 sm:$0xff]  }
  0x7d   :  { %1492 = vmatprep.subr.bf16.mxu0 %v2970_v41  ;;  %1831 = vmatprep.subr.bf16.mxu1 %v2973_v42  ;;  %v3027_v41 = vld [vmem:[#allocation6 + $0x3cc] ss:$16 sps:$4 sm:$0xff]   ;;  %v3022_v42 = vld [vmem:[#allocation6 + $0x3c0] ss:$16 sps:$4 sm:$0xff]  }
  0x7e   :  { %1431 = vmatprep.mubr.bf16.mxu0 %v166_v44  ;;  %1770 = vmatprep.mubr.bf16.mxu1 %v166_v44  ;;  %v189_v44 = vpack.c.bf16 %v141_v39, %v135_v38  ;;  %v3073_v38 = vld [vmem:[#allocation6 + $0x4c8] ss:$16 sps:$4 sm:$0xff]   ;;  %v3078_v39 = vld [vmem:[#allocation6 + $0x4e4] ss:$16 sps:$4 sm:$0xff]  }
  0x80   :  { %1493 = vmatpush1.bf16.msra.mxu0 %v2968_v43  ;;  %1832 = vmatpush1.bf16.msra.mxu1 %v2971_v45  ;;  %v3025_v43 = vld [vmem:[#allocation6 + $0x3c8] ss:$16 sps:$4 sm:$0xff]  }
  0x81   :  { %1494 = vmatprep.subr.bf16.mxu0 %v2976_v48  ;;  %1833 = vmatprep.subr.bf16.mxu1 %v2979_v49  ;;  %v54_v45 = vld [vmem:[#allocation3 + $0x18] sm:$0xff]  ;;  %v3028_v49 = vld [vmem:[#allocation6 + $0x3e0] ss:$16 sps:$4 sm:$0xff]  }
  0x82   :  { %v3033_v48 = vld [vmem:[#allocation6 + $0x3ec] ss:$16 sps:$4 sm:$0xff]  }
  0x83   :  { %1432 = vmatmul.mubr.bf16.gmra.mrb[12].mxu0 %v165_v51  ;;  %1771 = vmatmul.mubr.bf16.gmra.mrb[12].mxu1 %v165_v51  ;;  %v3031_v51 = vld [vmem:[#allocation6 + $0x3e8] ss:$16 sps:$4 sm:$0xff]  }
  0x84   :  { %1495 = vmatpush1.bf16.msra.mxu0 %v2974_v50  ;;  %1834 = vmatpush1.bf16.msra.mxu1 %v2977_v54  ;;  %v150_v50 = vpack.c.bf16 %v60_v46, %v54_v45  ;;  %v3036_v54 = vld [vmem:[#allocation6 + $0x404] ss:$16 sps:$4 sm:$0xff]  }
  0x85   :  { %1496 = vmatprep.subr.bf16.mxu0 %v2982_v55  ;;  %1835 = vmatprep.subr.bf16.mxu1 %v2985_v56  ;;  %v3039_v55 = vld [vmem:[#allocation6 + $0x40c] ss:$16 sps:$4 sm:$0xff]   ;;  %v3034_v56 = vld [vmem:[#allocation6 + $0x400] ss:$16 sps:$4 sm:$0xff]   ;;  %v3084_v46 = vld [vmem:[#allocation6 + $0x504] ss:$16 sps:$4 sm:$0xff]  }
  0x86   :  { %1441 = vmatprep.mubr.bf16.mxu0 %v172_v59  ;;  %1780 = vmatprep.mubr.bf16.mxu1 %v172_v59  ;;  %v72_v59 = vld [vmem:[#allocation3 + $0xa8] sm:$0xff]  ;;  %v107_v45 = vld [vmem:[#allocation3 + $0x1c0] sm:$0xff] }
  0x88   :  { %1497 = vmatpush1.bf16.msra.mxu0 %v2980_v57  ;;  %1836 = vmatpush1.bf16.msra.mxu1 %v2983_v58  ;;  %v149_v57 = vpack.c.bf16 %v59_v53, %v53_v52  ;;  %v66_v58 = vld [vmem:[#allocation3 + $0x78] sm:$0xff]  ;;  %v3090_v53 = vld [vmem:[#allocation6 + $0x524] ss:$16 sps:$4 sm:$0xff]  }
  0x89   :  { %1498 = vmatprep.subr.bf16.mxu0 %v2988_v62  ;;  %1837 = vmatprep.subr.bf16.mxu1 %v2991_v63  ;;  %v3045_v62 = vld [vmem:[#allocation6 + $0x42c] ss:$16 sps:$4 sm:$0xff]   ;;  %v3040_v63 = vld [vmem:[#allocation6 + $0x420] ss:$16 sps:$4 sm:$0xff]   ;;  %v156_v1 = vpack.c.bf16 %v72_v59, %v66_v58  ;;  %v3085_v52 = vld [vmem:[#allocation6 + $0x508] ss:$16 sps:$4 sm:$0xff]  }
  0x8a   :  { %v113_v58 = vld [vmem:[#allocation3 + $0x1f0] sm:$0xff]  ;;  %v119_v59 = vld [vmem:[#allocation3 + $0x220] sm:$0xff] }
  0x8b   :  { %1442 = vmatmul.mubr.bf16.gmra.mrb[16].mxu0 %v171_v0  ;;  %1781 = vmatmul.mubr.bf16.gmra.mrb[16].mxu1 %v171_v0  ;;  %v3043_v0 = vld [vmem:[#allocation6 + $0x428] ss:$16 sps:$4 sm:$0xff]  }
  0x8c   :  { %1499 = vmatpush1.bf16.msra.mxu0 %v2986_v3  ;;  %1838 = vmatpush1.bf16.msra.mxu1 %v2989_v4  ;;  %v71_v3 = vld [vmem:[#allocation3 + $0xa0] sm:$0xff] }
  0x8d   :  { %1500 = vmatprep.subr.bf16.mxu0 %v2994_v5  ;;  %1839 = vmatprep.subr.bf16.mxu1 %v2997_v6  ;;  %v3048_v4 = vld [vmem:[#allocation6 + $0x444] ss:$16 sps:$4 sm:$0xff]   ;;  %v3051_v5 = vld [vmem:[#allocation6 + $0x44c] ss:$16 sps:$4 sm:$0xff]   ;;  %v155_v6 = vpack.c.bf16 %v71_v3, %v65_v2  ;;  %v3097_v2 = vld [vmem:[#allocation6 + $0x548] ss:$16 sps:$4 sm:$0xff]  }
  0x8e   :  { %1451 = vmatprep.mubr.bf16.mxu0 %v178_v9  ;;  %1790 = vmatprep.mubr.bf16.mxu1 %v178_v9  ;;  %v3046_v9 = vld [vmem:[#allocation6 + $0x440] ss:$16 sps:$4 sm:$0xff]   ;;  %v3102_v3 = vld [vmem:[#allocation6 + $0x564] ss:$16 sps:$4 sm:$0xff]  }
  0x90   :  { %1501 = vmatpush1.bf16.msra.mxu0 %v2992_v7  ;;  %1840 = vmatpush1.bf16.msra.mxu1 %v2995_v8  ;;  %v78_v7 = vld [vmem:[#allocation3 + $0xd8] sm:$0xff]  ;;  %v84_v8 = vld [vmem:[#allocation3 + $0x108] sm:$0xff] }
  0x91   :  { %1502 = vmatprep.subr.bf16.mxu0 %v3000_v12  ;;  %1841 = vmatprep.subr.bf16.mxu1 %v3003_v13  ;;  %v3057_v12 = vld [vmem:[#allocation6 + $0x46c] ss:$16 sps:$4 sm:$0xff]   ;;  %v3052_v13 = vld [vmem:[#allocation6 + $0x460] ss:$16 sps:$4 sm:$0xff]  }
  0x93   :  { %1452 = vmatmul.mubr.bf16.gmra.mrb[20].mxu0 %v177_v15  ;;  %1791 = vmatmul.mubr.bf16.gmra.mrb[20].mxu1 %v177_v15  ;;  %v162_v15 = vpack.c.bf16 %v84_v8, %v78_v7  ;;  %v3103_v7 = vld [vmem:[#allocation6 + $0x568] ss:$16 sps:$4 sm:$0xff]   ;;  %v125_v8 = vld [vmem:[#allocation3 + $0x250] sm:$0xff] }
  0x94   :  { %1503 = vmatpush1.bf16.msra.mxu0 %v2998_v14  ;;  %1842 = vmatpush1.bf16.msra.mxu1 %v3001_v16  ;;  %v3055_v14 = vld [vmem:[#allocation6 + $0x468] ss:$16 sps:$4 sm:$0xff]   ;;  %v77_v16 = vld [vmem:[#allocation3 + $0xd0] sm:$0xff] }
  0x95   :  { %1504 = vmatprep.subr.bf16.mxu0 %v3006_v19  ;;  %1843 = vmatprep.subr.bf16.mxu1 %v3009_v20  ;;  %v3063_v19 = vld [vmem:[#allocation6 + $0x48c] ss:$16 sps:$4 sm:$0xff]   ;;  %v3058_v20 = vld [vmem:[#allocation6 + $0x480] ss:$16 sps:$4 sm:$0xff]  }
  0x96   :  { %1461 = vmatprep.mubr.bf16.mxu0 %v184_v22  ;;  %1800 = vmatprep.mubr.bf16.mxu1 %v184_v22  ;;  %v3061_v22 = vld [vmem:[#allocation6 + $0x488] ss:$16 sps:$4 sm:$0xff]  }
  0x98   :  { %1505 = vmatpush1.bf16.msra.mxu0 %v3004_v21  ;;  %1844 = vmatpush1.bf16.msra.mxu1 %v3007_v23  ;;  %v161_v21 = vpack.c.bf16 %v83_v17, %v77_v16  ;;  %v90_v23 = vld [vmem:[#allocation3 + $0x138] sm:$0xff]  ;;  %v3114_v17 = vld [vmem:[#allocation6 + $0x5a4] ss:$16 sps:$4 sm:$0xff]  }
  0x99   :  { %1506 = vmatprep.subr.bf16.mxu0 %v3012_v26  ;;  %1845 = vmatprep.subr.bf16.mxu1 %v3015_v27  ;;  %v3069_v26 = vld [vmem:[#allocation6 + $0x4ac] ss:$16 sps:$4 sm:$0xff]   ;;  %v3064_v27 = vld [vmem:[#allocation6 + $0x4a0] ss:$16 sps:$4 sm:$0xff]   ;;  %v3109_v16 = vld [vmem:[#allocation6 + $0x588] ss:$16 sps:$4 sm:$0xff]  }
  0x9b   :  { %1462 = vmatmul.mubr.bf16.gmra.mrb[24].mxu0 %v183_v30  ;;  %1801 = vmatmul.mubr.bf16.gmra.mrb[24].mxu1 %v183_v30  ;;  %v89_v30 = vld [vmem:[#allocation3 + $0x130] sm:$0xff] }
  0x9c   :  { %1507 = vmatpush1.bf16.msra.mxu0 %v3010_v28  ;;  %1846 = vmatpush1.bf16.msra.mxu1 %v3013_v29  ;;  %v168_v28 = vpack.c.bf16 %v96_v24, %v90_v23  ;;  %v3067_v29 = vld [vmem:[#allocation6 + $0x4a8] ss:$16 sps:$4 sm:$0xff]   ;;  %v143_v23 = vld [vmem:[#allocation3 + $0x2e0] sm:$0xff] }
  0x9d   :  { %1508 = vmatprep.subr.bf16.mxu0 %v3018_v33  ;;  %1847 = vmatprep.subr.bf16.mxu1 %v3021_v34  ;;  %v3075_v33 = vld [vmem:[#allocation6 + $0x4cc] ss:$16 sps:$4 sm:$0xff]   ;;  %v167_v34 = vpack.c.bf16 %v95_v31, %v89_v30  ;;  %v3120_v24 = vld [vmem:[#allocation6 + $0x5c4] ss:$16 sps:$4 sm:$0xff]   ;;  %v3121_v30 = vld [vmem:[#allocation6 + $0x5c8] ss:$16 sps:$4 sm:$0xff]  }
  0x9e   :  { %1471 = vmatprep.mubr.bf16.mxu0 %v190_v35  ;;  %1810 = vmatprep.mubr.bf16.mxu1 %v190_v35  ;;  %v102_v35 = vld [vmem:[#allocation3 + $0x198] sm:$0xff]  ;;  %v3126_v31 = vld [vmem:[#allocation6 + $0x5e4] ss:$16 sps:$4 sm:$0xff]  }
  0xa0   :  { %1509 = vmatpush1.bf16.msra.mxu0 %v3016_v36  ;;  %1848 = vmatpush1.bf16.msra.mxu1 %v3019_v37  ;;  %v108_v36 = vld [vmem:[#allocation3 + $0x1c8] sm:$0xff]  ;;  %v3070_v37 = vld [vmem:[#allocation6 + $0x4c0] ss:$16 sps:$4 sm:$0xff]  }
  0xa1   :  { %1510 = vmatprep.subr.bf16.mxu0 %v3024_v40  ;;  %1849 = vmatprep.subr.bf16.mxu1 %v3027_v41  ;;  %v3081_v40 = vld [vmem:[#allocation6 + $0x4ec] ss:$16 sps:$4 sm:$0xff]   ;;  %v174_v41 = vpack.c.bf16 %v108_v36, %v102_v35  ;;  %v3127_v35 = vld [vmem:[#allocation6 + $0x5e8] ss:$16 sps:$4 sm:$0xff]   ;;  %v55_v36 = vld [vmem:[#allocation3 + $0x20] sm:$0xff] }
  0xa3   :  { %1472 = vmatmul.mubr.bf16.gmra.mrb[28].mxu0 %v189_v44  ;;  %1811 = vmatmul.mubr.bf16.gmra.mrb[28].mxu1 %v189_v44  ;;  %v101_v44 = vld [vmem:[#allocation3 + $0x190] sm:$0xff] }
  0xa4   :  { %1511 = vmatpush1.bf16.msra.mxu0 %v3022_v42  ;;  %1850 = vmatpush1.bf16.msra.mxu1 %v3025_v43  ;;  %v3076_v42 = vld [vmem:[#allocation6 + $0x4e0] ss:$16 sps:$4 sm:$0xff]   ;;  %v3079_v43 = vld [vmem:[#allocation6 + $0x4e8] ss:$16 sps:$4 sm:$0xff]  }
  0xa5   :  { %1512 = vmatprep.subr.bf16.mxu0 %v3030_v47  ;;  %1851 = vmatprep.subr.bf16.mxu1 %v3033_v48  ;;  %v3087_v47 = vld [vmem:[#allocation6 + $0x50c] ss:$16 sps:$4 sm:$0xff]   ;;  %v173_v48 = vpack.c.bf16 %v107_v45, %v101_v44 }
  0xa6   :  { %1514 = vmatprep.mubr.bf16.mxu0 %v150_v50  ;;  %1853 = vmatprep.mubr.bf16.mxu1 %v150_v50  ;;  %v120_v50 = vld [vmem:[#allocation3 + $0x228] sm:$0xff]  ;;  %v86_v45 = vld [vmem:[#allocation3 + $0x118] sm:$0xff] }
  0xa7   :  { %v80_v44 = vld [vmem:[#allocation3 + $0xe8] sm:$0xff] }
  0xa8   :  { %1513 = vmatpush1.bf16.msra.mxu0 %v3028_v49  ;;  %1852 = vmatpush1.bf16.msra.mxu1 %v3031_v51  ;;  %v114_v49 = vld [vmem:[#allocation3 + $0x1f8] sm:$0xff]  ;;  %v3082_v51 = vld [vmem:[#allocation6 + $0x500] ss:$16 sps:$4 sm:$0xff]  }
  0xa9   :  { %1595 = vmatprep.subr.bf16.mxu0 %v3036_v54  ;;  %1934 = vmatprep.subr.bf16.mxu1 %v3039_v55  ;;  %v3093_v54 = vld [vmem:[#allocation6 + $0x52c] ss:$16 sps:$4 sm:$0xff]   ;;  %v180_v55 = vpack.c.bf16 %v120_v50, %v114_v49  ;;  %v85_v49 = vld [vmem:[#allocation3 + $0x110] sm:$0xff] }
  0xaa   :  { %v92_v50 = vld [vmem:[#allocation3 + $0x148] sm:$0xff] }
  0xab   :  { %1515 = vmatmul.mubr.bf16.vlgmr.msra.gmra.mrb[0].mxu0 %v149_v57  ;;  %1854 = vmatmul.mubr.bf16.vlgmr.msra.gmra.mrb[0].mxu1 %v149_v57  ;;  %v3091_v57 = vld [vmem:[#allocation6 + $0x528] ss:$16 sps:$4 sm:$0xff]  }
  0xac   :  { %1596 = vmatpush1.bf16.msra.mxu0 %v3034_v56  ;;  %1935 = vmatpush1.bf16.msra.mxu1 %v3037_v60  ;;  %v3088_v56 = vld [vmem:[#allocation6 + $0x520] ss:$16 sps:$4 sm:$0xff]   ;;  %v3096_v60 = vld [vmem:[#allocation6 + $0x544] ss:$16 sps:$4 sm:$0xff]  }
  0xad   :  { %1597 = vmatprep.subr.bf16.mxu0 %v3042_v61  ;;  %1936 = vmatprep.subr.bf16.mxu1 %v3045_v62  ;;  %v3099_v61 = vld [vmem:[#allocation6 + $0x54c] ss:$16 sps:$4 sm:$0xff]   ;;  %v179_v62 = vpack.c.bf16 %v119_v59, %v113_v58 }
  0xae   :  { %1524 = vmatprep.mubr.bf16.mxu0 %v156_v1  ;;  %1863 = vmatprep.mubr.bf16.mxu1 %v156_v1  ;;  %v3094_v1 = vld [vmem:[#allocation6 + $0x540] ss:$16 sps:$4 sm:$0xff]  }
  0xb0   :  { %1598 = vmatpush1.bf16.msra.mxu0 %v3040_v63  ;;  %1937 = vmatpush1.bf16.msra.mxu1 %v3043_v0  ;;  %v126_v63 = vld [vmem:[#allocation3 + $0x258] sm:$0xff]  ;;  %v132_v0 = vld [vmem:[#allocation3 + $0x288] sm:$0xff] }
  0xb1   :  { %1599 = vmatprep.subr.bf16.mxu0 %v3048_v4  ;;  %1938 = vmatprep.subr.bf16.mxu1 %v3051_v5  ;;  %v3105_v4 = vld [vmem:[#allocation6 + $0x56c] ss:$16 sps:$4 sm:$0xff]   ;;  %v186_v5 = vpack.c.bf16 %v132_v0, %v126_v63 }
  0xb2   :  { %v122_v63 = vld [vmem:[#allocation3 + $0x238] sm:$0xff] }
  0xb3   :  { %1525 = vmatmul.mubr.bf16.gmra.mrb[4].mxu0 %v155_v6  ;;  %1864 = vmatmul.mubr.bf16.gmra.mrb[4].mxu1 %v155_v6  ;;  %v3100_v6 = vld [vmem:[#allocation6 + $0x560] ss:$16 sps:$4 sm:$0xff]  }
  0xb4   :  { %1600 = vmatpush1.bf16.msra.mxu0 %v3046_v9  ;;  %1939 = vmatpush1.bf16.msra.mxu1 %v3049_v10  ;;  %v131_v9 = vld [vmem:[#allocation3 + $0x280] sm:$0xff] }
  0xb5   :  { %1601 = vmatprep.subr.bf16.mxu0 %v3054_v11  ;;  %1940 = vmatprep.subr.bf16.mxu1 %v3057_v12  ;;  %v3108_v10 = vld [vmem:[#allocation6 + $0x584] ss:$16 sps:$4 sm:$0xff]   ;;  %v3111_v11 = vld [vmem:[#allocation6 + $0x58c] ss:$16 sps:$4 sm:$0xff]   ;;  %v185_v12 = vpack.c.bf16 %v131_v9, %v125_v8 }
  0xb6   :  { %1534 = vmatprep.mubr.bf16.mxu0 %v162_v15  ;;  %1873 = vmatprep.mubr.bf16.mxu1 %v162_v15  ;;  %v3106_v15 = vld [vmem:[#allocation6 + $0x580] ss:$16 sps:$4 sm:$0xff]  }
  0xb7   :  { %v127_v8 = vld [vmem:[#allocation3 + $0x260] sm:$0xff]  ;;  %v133_v9 = vld [vmem:[#allocation3 + $0x290] sm:$0xff] }
  0xb8   :  { %1602 = vmatpush1.bf16.msra.mxu0 %v3052_v13  ;;  %1941 = vmatpush1.bf16.msra.mxu1 %v3055_v14  ;;  %v138_v13 = vld [vmem:[#allocation3 + $0x2b8] sm:$0xff]  ;;  %v144_v14 = vld [vmem:[#allocation3 + $0x2e8] sm:$0xff] }
  0xb9   :  { %1603 = vmatprep.subr.bf16.mxu0 %v3060_v18  ;;  %1942 = vmatprep.subr.bf16.mxu1 %v3063_v19  ;;  %v3117_v18 = vld [vmem:[#allocation6 + $0x5ac] ss:$16 sps:$4 sm:$0xff]   ;;  %v192_v19 = vpack.c.bf16 %v144_v14, %v138_v13  ;;  %v139_v14 = vld [vmem:[#allocation3 + $0x2c0] sm:$0xff] }
  0xbb   :  { %1535 = vmatmul.mubr.bf16.gmra.mrb[8].mxu0 %v161_v21  ;;  %1874 = vmatmul.mubr.bf16.gmra.mrb[8].mxu1 %v161_v21  ;;  %v3115_v21 = vld [vmem:[#allocation6 + $0x5a8] ss:$16 sps:$4 sm:$0xff]  }
  0xbc   :  { %1604 = vmatpush1.bf16.msra.mxu0 %v3058_v20  ;;  %1943 = vmatpush1.bf16.msra.mxu1 %v3061_v22  ;;  %v3112_v20 = vld [vmem:[#allocation6 + $0x5a0] ss:$16 sps:$4 sm:$0xff]  }
  0xbd   :  { %1605 = vmatprep.subr.bf16.mxu0 %v3066_v25  ;;  %1944 = vmatprep.subr.bf16.mxu1 %v3069_v26  ;;  %v137_v22 = vld [vmem:[#allocation3 + $0x2b0] sm:$0xff]  ;;  %v3123_v25 = vld [vmem:[#allocation6 + $0x5cc] ss:$16 sps:$4 sm:$0xff]  }
  0xbe   :  { %1544 = vmatprep.mubr.bf16.mxu0 %v168_v28  ;;  %1883 = vmatprep.mubr.bf16.mxu1 %v168_v28  ;;  %v191_v26 = vpack.c.bf16 %v143_v23, %v137_v22  ;;  %v62_v28 = vld [vmem:[#allocation3 + $0x58] sm:$0xff] }
  0xbf   :  { %v387_v22 = vld [vmem:[%s3499_s2] sm:$0xf]  ;;  %s3209_s2 = smov [#allocation8]  }
  0xc0   :  { %1606 = vmatpush1.bf16.msra.mxu0 %v3064_v27  ;;  %1945 = vmatpush1.bf16.msra.mxu1 %v3067_v29  ;;  %v56_v27 = vld [vmem:[#allocation3 + $0x28] sm:$0xff]  ;;  %v3118_v29 = vld [vmem:[#allocation6 + $0x5c0] ss:$16 sps:$4 sm:$0xff]  }
  0xc1   :  { %1607 = vmatprep.subr.bf16.mxu0 %v3072_v32  ;;  %1946 = vmatprep.subr.bf16.mxu1 %v3075_v33  ;;  %v3129_v32 = vld [vmem:[#allocation6 + $0x5ec] ss:$16 sps:$4 sm:$0xff]   ;;  %v152_v33 = vpack.c.bf16 %v62_v28, %v56_v27 }
  0xc2   :  { %v2111_v27 = vld [vmem:[%s3500_s3] sm:$0xf]  ;;  %s2438_s3 = sshll.u32 %s3209_s2, 4  ;;  %s2439_s3 = int_to_ptr.vmem [resolvable:$true] %s2438_s3 }
  0xc3   :  { %1545 = vmatmul.mubr.bf16.gmra.mrb[12].mxu0 %v167_v34  ;;  %1884 = vmatmul.mubr.bf16.gmra.mrb[12].mxu1 %v167_v34  ;;  %v3124_v34 = vld [vmem:[#allocation6 + $0x5e0] ss:$16 sps:$4 sm:$0xff]   ;;  %s3174_s24 = scalar_lea.vmem %s2439_s3, 16  ;;  %s3178_s25 = scalar_lea.vmem %s2439_s3, 32 }
  0xc4   :  { %1608 = vmatpush1.bf16.msra.mxu0 %v3070_v37  ;;  %1947 = vmatpush1.bf16.msra.mxu1 %v3073_v38  ;;  %v61_v37 = vld [vmem:[#allocation3 + $0x50] sm:$0xff]  ;;  %v68_v38 = vld [vmem:[#allocation3 + $0x88] sm:$0xff]  ;;  %p3175_p2 = scmp.ne.s32.totalorder %s2439_s3, %s3174_s24  ;;  %p3179_p3 = scmp.lt.s32.totalorder %s2439_s3, %s2439_s3 }
  0xc5   :  { %1609 = vmatprep.subr.bf16.mxu0 %v3078_v39  ;;  %1948 = vmatprep.subr.bf16.mxu1 %v3081_v40  ;;  %v74_v39 = vld [vmem:[#allocation3 + $0xb8] sm:$0xff]  ;;  %v151_v40 = vpack.c.bf16 %v61_v37, %v55_v36  ;;  %p3180_p4 = scmp.lt.s32.totalorder %s3178_s25, %s3174_s24 }
  0xc6   :  { %1554 = vmatprep.mubr.bf16.mxu0 %v174_v41  ;;  %1893 = vmatprep.mubr.bf16.mxu1 %v174_v41  ;;  %v158_v41 = vpack.c.bf16 %v74_v39, %v68_v38 }
  0xc7   :  { %p3181_p5 = por %p3180_p4, %p3179_p3 }
  0xc8   :  { %1610 = vmatpush1.bf16.msra.mxu0 %v3076_v42  ;;  %1949 = vmatpush1.bf16.msra.mxu1 %v3079_v43  ;;  %v67_v42 = vld [vmem:[#allocation3 + $0x80] sm:$0xff]  ;;  %v73_v43 = vld [vmem:[#allocation3 + $0xb0] sm:$0xff] }
  0xc9   :  { %1611 = vmatprep.subr.bf16.mxu0 %v3084_v46  ;;  %1950 = vmatprep.subr.bf16.mxu1 %v3087_v47  ;;  %v157_v46 = vpack.c.bf16 %v73_v43, %v67_v42  ;;  %v164_v47 = vpack.c.bf16 %v86_v45, %v80_v44  ;;  %p3182_p6 = pnand %p3181_p5, %p3175_p2 }
  0xcb   :  { %1555 = vmatmul.mubr.bf16.gmra.mrb[16].mxu0 %v173_v48  ;;  %1894 = vmatmul.mubr.bf16.gmra.mrb[16].mxu1 %v173_v48  ;;  %v79_v48 = vld [vmem:[#allocation3 + $0xe0] sm:$0xff] }
  0xcc   :  { %1612 = vmatpush1.bf16.msra.mxu0 %v3082_v51  ;;  %1951 = vmatpush1.bf16.msra.mxu1 %v3085_v52  ;;  %v98_v51 = vld [vmem:[#allocation3 + $0x178] sm:$0xff]  ;;  %v163_v52 = vpack.c.bf16 %v85_v49, %v79_v48 }
  0xcd   :  { %1613 = vmatprep.subr.bf16.mxu0 %v3090_v53  ;;  %1952 = vmatprep.subr.bf16.mxu1 %v3093_v54  ;;  %v170_v53 = vpack.c.bf16 %v98_v51, %v92_v50  ;;  %v91_v54 = vld [vmem:[#allocation3 + $0x140] sm:$0xff] }
  0xce   :  { %1564 = vmatprep.mubr.bf16.mxu0 %v180_v55  ;;  %1903 = vmatprep.mubr.bf16.mxu1 %v180_v55  ;;  %v97_v55 = vld [vmem:[#allocation3 + $0x170] sm:$0xff] }
  0xcf   :  { %v169_v58 = vpack.c.bf16 %v97_v55, %v91_v54 }
  0xd0   :  { %1614 = vmatpush1.bf16.msra.mxu0 %v3088_v56  ;;  %1953 = vmatpush1.bf16.msra.mxu1 %v3091_v57  ;;  %v104_v56 = vld [vmem:[#allocation3 + $0x1a8] sm:$0xff]  ;;  %v110_v57 = vld [vmem:[#allocation3 + $0x1d8] sm:$0xff] }
  0xd1   :  { %1615 = vmatprep.subr.bf16.mxu0 %v3096_v60  ;;  %1954 = vmatprep.subr.bf16.mxu1 %v3099_v61  ;;  %v176_v59 = vpack.c.bf16 %v110_v57, %v104_v56  ;;  %v103_v60 = vld [vmem:[#allocation3 + $0x1a0] sm:$0xff]  ;;  %v109_v61 = vld [vmem:[#allocation3 + $0x1d0] sm:$0xff] }
  0xd2   :  { %v175_v0 = vpack.c.bf16 %v109_v61, %v103_v60 }
  0xd3   :  { %1565 = vmatmul.mubr.bf16.gmra.mrb[20].mxu0 %v179_v62  ;;  %1904 = vmatmul.mubr.bf16.gmra.mrb[20].mxu1 %v179_v62  ;;  %v116_v62 = vld [vmem:[#allocation3 + $0x208] sm:$0xff] }
  0xd4   :  { %1616 = vmatpush1.bf16.msra.mxu0 %v3094_v1  ;;  %1955 = vmatpush1.bf16.msra.mxu1 %v3097_v2  ;;  %v182_v1 = vpack.c.bf16 %v122_v63, %v116_v62  ;;  %v115_v2 = vld [vmem:[#allocation3 + $0x200] sm:$0xff] }
  0xd5   :  { %1617 = vmatprep.subr.bf16.mxu0 %v3102_v3  ;;  %1956 = vmatprep.subr.bf16.mxu1 %v3105_v4  ;;  %v121_v3 = vld [vmem:[#allocation3 + $0x230] sm:$0xff]  ;;  %v128_v4 = vld [vmem:[#allocation3 + $0x268] sm:$0xff] }
  0xd6   :  { %1574 = vmatprep.mubr.bf16.mxu0 %v186_v5  ;;  %1913 = vmatprep.mubr.bf16.mxu1 %v186_v5  ;;  %v134_v5 = vld [vmem:[#allocation3 + $0x298] sm:$0xff] }
  0xd8   :  { %1618 = vmatpush1.bf16.msra.mxu0 %v3100_v6  ;;  %1957 = vmatpush1.bf16.msra.mxu1 %v3103_v7  ;;  %v181_v6 = vpack.c.bf16 %v121_v3, %v115_v2  ;;  %v188_v7 = vpack.c.bf16 %v134_v5, %v128_v4 }
  0xd9   :  { %1619 = vmatprep.subr.bf16.mxu0 %v3108_v10  ;;  %1958 = vmatprep.subr.bf16.mxu1 %v3111_v11  ;;  %v140_v10 = vld [vmem:[#allocation3 + $0x2c8] sm:$0xff]  ;;  %v146_v11 = vld [vmem:[#allocation3 + $0x2f8] sm:$0xff] }
  0xda   :  { %v194_v13 = vpack.c.bf16 %v146_v11, %v140_v10 }
  0xdb   :  { %1575 = vmatmul.mubr.bf16.gmra.mrb[24].mxu0 %v185_v12  ;;  %1914 = vmatmul.mubr.bf16.gmra.mrb[24].mxu1 %v185_v12  ;;  %v187_v12 = vpack.c.bf16 %v133_v9, %v127_v8 }
  0xdc   :  { %1620 = vmatpush1.bf16.msra.mxu0 %v3106_v15  ;;  %1959 = vmatpush1.bf16.msra.mxu1 %v3109_v16  ;;  %v145_v15 = vld [vmem:[#allocation3 + $0x2f0] sm:$0xff] }
  0xdd   :  { %1621 = vmatprep.subr.bf16.mxu0 %v3114_v17  ;;  %1960 = vmatprep.subr.bf16.mxu1 %v3117_v18  ;;  %v193_v16 = vpack.c.bf16 %v145_v15, %v139_v14  ;;  %v3208_v17 = vmov 0   ;;  %v389_v18 = vlaneseq }
  0xde   :  { %1584 = vmatprep.mubr.bf16.mxu0 %v192_v19  ;;  %1923 = vmatprep.mubr.bf16.mxu1 %v192_v19 }
  0xdf   :  { %2840 = vset.pattern.permute.xlu1 %v3208_v17  ;;  %2841 = vset.pattern.permute.xlu0 %v3208_v17  ;;  %v3268_v19 = vshrl.u32 %v389_v18, 7 }
  0xe0   :  { %1622 = vmatpush1.bf16.msra.mxu0 %v3112_v20  ;;  %1961 = vmatpush1.bf16.msra.mxu1 %v3115_v21 }
  0xe1   :  { %1623 = vmatprep.subr.bf16.mxu0 %v3120_v24  ;;  %1962 = vmatprep.subr.bf16.mxu1 %v3123_v25  ;;  %v3271_v20 = vsub.s32 0, %v3268_v19  ;;  %v399_v21 = vsub.s32 2, %v3268_v19  ;;  %v395_v23 = vsub.s32 1, %v3268_v19  ;;  %v403_v24 = vsub.s32 3, %v3268_v19 }
  0xe3   :  { %1585 = vmatmul.mubr.bf16.gmra.mrb[28].mxu0 %v191_v26  ;;  %1924 = vmatmul.mubr.bf16.gmra.mrb[28].mxu1 %v191_v26  ;;  %v3280_v25 = vrot.slane %v387_v22, %v3271_v20  ;;  %v3282_v26 = vrot.slane %v387_v22, %v399_v21  ;;  %v3287_v28 = vrot.slane %v387_v22, %v395_v23 }
  0xe4   :  { %1624 = vmatpush1.bf16.msra.mxu0 %v3118_v29  ;;  %1963 = vmatpush1.bf16.msra.mxu1 %v3121_v30  ;;  %v3289_v29 = vrot.slane %v387_v22, %v403_v24  ;;  %v3297_v38 = vrot.slane %v2111_v27, %v395_v23 }
  0xe5   :  { %1625 = vmatprep.subr.bf16.mxu0 %v3126_v31  ;;  %1964 = vmatprep.subr.bf16.mxu1 %v3129_v32 }
  0xe6   :  { %1627 = vmatprep.mubr.bf16.mxu0 %v152_v33  ;;  %1966 = vmatprep.mubr.bf16.mxu1 %v152_v33  ;;  %v3293_v33 = vrot.slane %v2111_v27, %v3271_v20 }
  0xe8   :  { %1626 = vmatpush1.bf16.msra.mxu0 %v3124_v34  ;;  %1965 = vmatpush1.bf16.msra.mxu1 %v3127_v35 }
  0xeb   :  { %1628 = vmatmul.mubr.bf16.vlgmr.msra.gmra.mrb[0].mxu0 %v151_v40  ;;  %1967 = vmatmul.mubr.bf16.vlgmr.msra.gmra.mrb[0].mxu1 %v151_v40 }
  0xec   :  { %1637 = vmatprep.mubr.bf16.mxu0 %v158_v41  ;;  %1976 = vmatprep.mubr.bf16.mxu1 %v158_v41 }
  0xf3   :  { %1638 = vmatmul.mubr.bf16.gmra.mrb[4].mxu0 %v157_v46  ;;  %1977 = vmatmul.mubr.bf16.gmra.mrb[4].mxu1 %v157_v46 }
  0xf4   :  { %1647 = vmatprep.mubr.bf16.mxu0 %v164_v47  ;;  %1986 = vmatprep.mubr.bf16.mxu1 %v164_v47  ;;  %v3301_v47 = vrot.slane %v2111_v27, %v399_v21 }
  0xfb   :  { %1648 = vmatmul.mubr.bf16.gmra.mrb[8].mxu0 %v163_v52  ;;  %1987 = vmatmul.mubr.bf16.gmra.mrb[8].mxu1 %v163_v52 }
  0xfc   :  { %1657 = vmatprep.mubr.bf16.mxu0 %v170_v53  ;;  %1996 = vmatprep.mubr.bf16.mxu1 %v170_v53 }
 0x103   :  { %1658 = vmatmul.mubr.bf16.gmra.mrb[12].mxu0 %v169_v58  ;;  %1997 = vmatmul.mubr.bf16.gmra.mrb[12].mxu1 %v169_v58  ;;  %v3309_v58 = vrot.slane %v2111_v27, %v403_v24 }
 0x104   :  { %1667 = vmatprep.mubr.bf16.mxu0 %v176_v59  ;;  %2006 = vmatprep.mubr.bf16.mxu1 %v176_v59 }
 0x10b   :  { %1668 = vmatmul.mubr.bf16.gmra.mrb[16].mxu0 %v175_v0  ;;  %2007 = vmatmul.mubr.bf16.gmra.mrb[16].mxu1 %v175_v0 }
 0x10c   :  { %1677 = vmatprep.mubr.bf16.mxu0 %v182_v1  ;;  %2016 = vmatprep.mubr.bf16.mxu1 %v182_v1 }
 0x113   :  { %1678 = vmatmul.mubr.bf16.gmra.mrb[20].mxu0 %v181_v6  ;;  %2017 = vmatmul.mubr.bf16.gmra.mrb[20].mxu1 %v181_v6 }
 0x114   :  { %1687 = vmatprep.mubr.bf16.mxu0 %v188_v7  ;;  %2026 = vmatprep.mubr.bf16.mxu1 %v188_v7 }
 0x11b   :  { %1688 = vmatmul.mubr.bf16.gmra.mrb[24].mxu0 %v187_v12  ;;  %2027 = vmatmul.mubr.bf16.gmra.mrb[24].mxu1 %v187_v12 }
 0x11c   :  { %1697 = vmatprep.mubr.bf16.mxu0 %v194_v13  ;;  %2036 = vmatprep.mubr.bf16.mxu1 %v194_v13 }
 0x123   :  { %1698 = vmatmul.mubr.bf16.gmra.mrb[28].mxu0 %v193_v16  ;;  %2037 = vmatmul.mubr.bf16.gmra.mrb[28].mxu1 %v193_v16 }
 0x1be   :  { %v1629_v30 = vpop.f32.mrb[0].mxu0  ;;  %v1968_v31 = vpop.f32.mrb[0].mxu1 }
 0x1bf   :  { %v2640_v32 = vadd.f32 %v1629_v30, %v3280_v25  ;;  %v2672_v34 = vadd.f32 %v1968_v31, %v3282_v26  ;;  %v1631_v35 = vpop.f32.mrb[1].mxu0  ;;  %v1970_v36 = vpop.f32.mrb[1].mxu1 }
 0x1c0   :  { %v2641_v37 = vadd.f32 %v1631_v35, %v3287_v28  ;;  %v1633_v39 = vpop.f32.mrb[2].mxu0  ;;  %v1972_v40 = vpop.f32.mrb[2].mxu1  ;;  %v2673_v42 = vadd.f32 %v1970_v36, %v3289_v29 }
 0x1c1   :  { %v2047_v41 = vmax.f32 %v2640_v32, 0.0  ;;  %v2642_v43 = vadd.f32 %v1633_v39, %v3280_v25  ;;  %v1635_v44 = vpop.f32.mrb[3].mxu0  ;;  %v1974_v45 = vpop.f32.mrb[3].mxu1  ;;  %v2049_v46 = vmax.f32 %v2672_v34, 0.0  ;;  %v2674_v52 = vadd.f32 %v1972_v40, %v3282_v26 }
 0x1c2   :  { %v2048_v48 = vmax.f32 %v2641_v37, 0.0  ;;  %v2643_v49 = vadd.f32 %v1635_v44, %v3287_v28  ;;  %v2050_v55 = vmax.f32 %v2673_v42, 0.0  ;;  %v2675_v57 = vadd.f32 %v1974_v45, %v3289_v29 }
 0x1c3   :  { %v2133_v50 = vmul.f32 %v3293_v33, %v2047_v41  ;;  %v2051_v51 = vmax.f32 %v2642_v43, 0.0  ;;  %v2135_v59 = vmul.f32 %v3301_v47, %v2049_v46  ;;  %v2053_v0 = vmax.f32 %v2674_v52, 0.0 }
 0x1c4   :  { %v2134_v53 = vmul.f32 %v3297_v38, %v2048_v48  ;;  %v2052_v54 = vmax.f32 %v2643_v49, 0.0  ;;  %v2054_v10 = vmax.f32 %v2675_v57, 0.0  ;;  %v2136_v15 = vmul.f32 %v3309_v58, %v2050_v55 }
 0x1c5   :  { %v2137_v56 = vmul.f32 %v3293_v33, %v2051_v51  ;;  %v2139_v23 = vmul.f32 %v3301_v47, %v2053_v0 }
 0x1c6   :  { %v2138_v60 = vmul.f32 %v3297_v38, %v2052_v54  ;;  %v1639_v61 = vpop.f32.mrb[4].mxu0  ;;  %v1978_v62 = vpop.f32.mrb[4].mxu1  ;;  %v2197_v63 = vadd.f32 %v2134_v53, %v2133_v50  ;;  %v2140_v36 = vmul.f32 %v3309_v58, %v2054_v10 }
 0x1c7   :  { %v2644_v1 = vadd.f32 %v1639_v61, %v3280_v25  ;;  %v2676_v2 = vadd.f32 %v1978_v62, %v3282_v26  ;;  %v1641_v3 = vpop.f32.mrb[5].mxu0  ;;  %v1980_v4 = vpop.f32.mrb[5].mxu1 }
 0x1c8   :  { %v2202_v5 = vadd.f32 %v2138_v60, %v2137_v56  ;;  %v2645_v6 = vadd.f32 %v1641_v3, %v3287_v28  ;;  %v1643_v7 = vpop.f32.mrb[6].mxu0  ;;  %v1982_v8 = vpop.f32.mrb[6].mxu1  ;;  %v2198_v9 = vadd.f32 %v2197_v63, %v2135_v59  ;;  %v2677_v27 = vadd.f32 %v1980_v4, %v3289_v29 }
 0x1c9   :  { %v2055_v11 = vmax.f32 %v2644_v1, 0.0  ;;  %v2646_v12 = vadd.f32 %v1643_v7, %v3280_v25  ;;  %v1645_v13 = vpop.f32.mrb[7].mxu0  ;;  %v1984_v14 = vpop.f32.mrb[7].mxu1  ;;  %v2057_v16 = vmax.f32 %v2676_v2, 0.0  ;;  %v2678_v21 = vadd.f32 %v1982_v8, %v3282_v26 }
 0x1ca   :  { %v2056_v17 = vmax.f32 %v2645_v6, 0.0  ;;  %v2647_v22 = vadd.f32 %v1645_v13, %v3287_v28  ;;  %v2679_v34 = vadd.f32 %v1984_v14, %v3289_v29  ;;  %v2199_v35 = vadd.f32 %v2198_v9, %v2136_v15 }
 0x1cb   :  { %v2141_v24 = vmul.f32 %v3293_v33, %v2055_v11  ;;  %v2059_v30 = vmax.f32 %v2646_v12, 0.0  ;;  %v2203_v39 = vadd.f32 %v2202_v5, %v2139_v23  ;;  %v2143_v40 = vmul.f32 %v3301_v47, %v2057_v16 }
 0x1cc   :  { %v2142_v31 = vmul.f32 %v3297_v38, %v2056_v17  ;;  %v2060_v32 = vmax.f32 %v2647_v22, 0.0  ;;  %v2061_v41 = vmax.f32 %v2678_v21, 0.0  ;;  %2200 = vadd.xlane.f32.xlu0 %v2199_v35  ;;  %v2058_v46 = vmax.f32 %v2677_v27, 0.0 }
 0x1cd   :  { %v2145_v37 = vmul.f32 %v3293_v33, %v2059_v30  ;;  %v2204_v52 = vadd.f32 %v2203_v39, %v2140_v36  ;;  %v2062_v54 = vmax.f32 %v2679_v34, 0.0 }
 0x1ce   :  { %v2146_v42 = vmul.f32 %v3297_v38, %v2060_v32  ;;  %v1649_v43 = vpop.f32.mrb[8].mxu0  ;;  %v1988_v44 = vpop.f32.mrb[8].mxu1  ;;  %v2207_v45 = vadd.f32 %v2142_v31, %v2141_v24  ;;  %v2147_v1 = vmul.f32 %v3301_v47, %v2061_v41  ;;  %v2144_v8 = vmul.f32 %v3309_v58, %v2058_v46 }
 0x1cf   :  { %v2648_v48 = vadd.f32 %v1649_v43, %v3280_v25  ;;  %v2680_v49 = vadd.f32 %v1988_v44, %v3282_v26  ;;  %v1651_v50 = vpop.f32.mrb[9].mxu0  ;;  %v1990_v51 = vpop.f32.mrb[9].mxu1  ;;  %v2148_v9 = vmul.f32 %v3309_v58, %v2062_v54 }
 0x1d0   :  { %v2212_v53 = vadd.f32 %v2146_v42, %v2145_v37  ;;  %v2649_v55 = vadd.f32 %v1651_v50, %v3287_v28  ;;  %v1653_v56 = vpop.f32.mrb[10].mxu0  ;;  %v1992_v57 = vpop.f32.mrb[10].mxu1  ;;  %v2208_v59 = vadd.f32 %v2207_v45, %v2143_v40  ;;  %v2681_v61 = vadd.f32 %v1990_v51, %v3289_v29  ;;  %2205 = vadd.xlane.f32.xlu0 %v2204_v52 }
 0x1d1   :  { %v2063_v60 = vmax.f32 %v2648_v48, 0.0  ;;  %v2650_v62 = vadd.f32 %v1653_v56, %v3280_v25  ;;  %v1655_v63 = vpop.f32.mrb[11].mxu0  ;;  %v1994_v0 = vpop.f32.mrb[11].mxu1  ;;  %v2065_v2 = vmax.f32 %v2680_v49, 0.0  ;;  %v2682_v7 = vadd.f32 %v1992_v57, %v3282_v26 }
 0x1d2   :  { %v2064_v3 = vmax.f32 %v2649_v55, 0.0  ;;  %v2651_v4 = vadd.f32 %v1655_v63, %v3287_v28  ;;  %v2683_v12 = vadd.f32 %v1994_v0, %v3289_v29  ;;  %v2066_v13 = vmax.f32 %v2681_v61, 0.0 }
 0x1d3   :  { %v2149_v5 = vmul.f32 %v3293_v33, %v2063_v60  ;;  %v2067_v6 = vmax.f32 %v2650_v62, 0.0  ;;  %v2209_v15 = vadd.f32 %v2208_v59, %v2144_v8  ;;  %v2213_v16 = vadd.f32 %v2212_v53, %v2147_v1 }
 0x1d4   :  { %v2150_v10 = vmul.f32 %v3297_v38, %v2064_v3  ;;  %v2068_v11 = vmax.f32 %v2651_v4, 0.0  ;;  %v2151_v17 = vmul.f32 %v3301_v47, %v2065_v2  ;;  %v2069_v27 = vmax.f32 %v2682_v7, 0.0 }
 0x1d5   :  { %v2153_v14 = vmul.f32 %v3293_v33, %v2067_v6  ;;  %2210 = vadd.xlane.f32.xlu1 %v2209_v15  ;;  %v2214_v35 = vadd.f32 %v2213_v16, %v2148_v9  ;;  %v2070_v37 = vmax.f32 %v2683_v12, 0.0  ;;  %v2152_v43 = vmul.f32 %v3309_v58, %v2066_v13 }
 0x1d6   :  { %v2217_v21 = vadd.f32 %v2150_v10, %v2149_v5  ;;  %v2154_v22 = vmul.f32 %v3297_v38, %v2068_v11  ;;  %v1659_v23 = vpop.f32.mrb[12].mxu0  ;;  %v1998_v24 = vpop.f32.mrb[12].mxu1  ;;  %v2155_v54 = vmul.f32 %v3301_v47, %v2069_v27 }
 0x1d7   :  { %v2652_v30 = vadd.f32 %v1659_v23, %v3280_v25  ;;  %v2684_v31 = vadd.f32 %v1998_v24, %v3282_v26  ;;  %v1661_v32 = vpop.f32.mrb[13].mxu0  ;;  %v2000_v34 = vpop.f32.mrb[13].mxu1  ;;  %v2156_v59 = vmul.f32 %v3309_v58, %v2070_v37 }
 0x1d8   :  { %v2222_v36 = vadd.f32 %v2154_v22, %v2153_v14  ;;  %v2653_v39 = vadd.f32 %v1661_v32, %v3287_v28  ;;  %v1663_v40 = vpop.f32.mrb[14].mxu0  ;;  %v2002_v41 = vpop.f32.mrb[14].mxu1  ;;  %v2218_v42 = vadd.f32 %v2217_v21, %v2151_v17  ;;  %v2685_v45 = vadd.f32 %v2000_v34, %v3289_v29 }
 0x1d9   :  { %v2071_v44 = vmax.f32 %v2652_v30, 0.0  ;;  %v2654_v46 = vadd.f32 %v1663_v40, %v3280_v25  ;;  %v1665_v48 = vpop.f32.mrb[15].mxu0  ;;  %v2004_v49 = vpop.f32.mrb[15].mxu1  ;;  %v2073_v50 = vmax.f32 %v2684_v31, 0.0  ;;  %v2686_v52 = vadd.f32 %v2002_v41, %v3282_v26  ;;  %2215 = vadd.xlane.f32.xlu1 %v2214_v35 }
 0x1da   :  { %v2072_v51 = vmax.f32 %v2653_v39, 0.0  ;;  %v2655_v53 = vadd.f32 %v1665_v48, %v3287_v28  ;;  %v2687_v57 = vadd.f32 %v2004_v49, %v3289_v29  ;;  %v2074_v62 = vmax.f32 %v2685_v45, 0.0 }
 0x1db   :  { %v2157_v55 = vmul.f32 %v3293_v33, %v2071_v44  ;;  %v2075_v56 = vmax.f32 %v2654_v46, 0.0  ;;  %v2219_v0 = vadd.f32 %v2218_v42, %v2152_v43  ;;  %v2223_v1 = vadd.f32 %v2222_v36, %v2155_v54 }
 0x1dc   :  { %v2158_v60 = vmul.f32 %v3297_v38, %v2072_v51  ;;  %v2076_v61 = vmax.f32 %v2655_v53, 0.0  ;;  %v2159_v2 = vmul.f32 %v3301_v47, %v2073_v50  ;;  %v2077_v4 = vmax.f32 %v2686_v52, 0.0 }
 0x1dd   :  { %v2161_v63 = vmul.f32 %v3293_v33, %v2075_v56  ;;  %v2078_v8 = vmax.f32 %v2687_v57, 0.0  ;;  %2220 = vadd.xlane.f32.xlu0 %v2219_v0  ;;  %v2224_v11 = vadd.f32 %v2223_v1, %v2156_v59  ;;  %v2160_v32 = vmul.f32 %v3309_v58, %v2074_v62 }
 0x1de   :  { %v2227_v3 = vadd.f32 %v2158_v60, %v2157_v55  ;;  %v2162_v5 = vmul.f32 %v3297_v38, %v2076_v61  ;;  %v1669_v6 = vpop.f32.mrb[16].mxu0  ;;  %v2008_v7 = vpop.f32.mrb[16].mxu1  ;;  %v2163_v37 = vmul.f32 %v3301_v47, %v2077_v4 }
 0x1df   :  { %v2656_v9 = vadd.f32 %v1669_v6, %v3280_v25  ;;  %v2688_v10 = vadd.f32 %v2008_v7, %v3282_v26  ;;  %v1671_v12 = vpop.f32.mrb[17].mxu0  ;;  %v2010_v13 = vpop.f32.mrb[17].mxu1  ;;  %2225 = vadd.xlane.f32.xlu1 %v2224_v11  ;;  %v2164_v42 = vmul.f32 %v3309_v58, %v2078_v8 }
 0x1e0   :  { %v2232_v14 = vadd.f32 %v2162_v5, %v2161_v63  ;;  %v2657_v15 = vadd.f32 %v1671_v12, %v3287_v28  ;;  %v2689_v16 = vadd.f32 %v2010_v13, %v3289_v29  ;;  %v1673_v17 = vpop.f32.mrb[18].mxu0  ;;  %v2012_v21 = vpop.f32.mrb[18].mxu1  ;;  %v2228_v22 = vadd.f32 %v2227_v3, %v2159_v2 }
 0x1e1   :  { %v2079_v23 = vmax.f32 %v2656_v9, 0.0  ;;  %v2658_v24 = vadd.f32 %v1673_v17, %v3280_v25  ;;  %v2690_v27 = vadd.f32 %v2012_v21, %v3282_v26  ;;  %v1675_v30 = vpop.f32.mrb[19].mxu0  ;;  %v2014_v31 = vpop.f32.mrb[19].mxu1  ;;  %v2081_v34 = vmax.f32 %v2688_v10, 0.0 }
 0x1e2   :  { %v2080_v35 = vmax.f32 %v2657_v15, 0.0  ;;  %v2659_v36 = vadd.f32 %v1675_v30, %v3287_v28  ;;  %v2082_v40 = vmax.f32 %v2689_v16, 0.0  ;;  %v2691_v45 = vadd.f32 %v2014_v31, %v3289_v29 }
 0x1e3   :  { %v2165_v39 = vmul.f32 %v3293_v33, %v2079_v23  ;;  %v2083_v41 = vmax.f32 %v2658_v24, 0.0  ;;  %v2085_v48 = vmax.f32 %v2690_v27, 0.0  ;;  %v2229_v49 = vadd.f32 %v2228_v22, %v2160_v32 }
 0x1e4   :  { %v2166_v43 = vmul.f32 %v3297_v38, %v2080_v35  ;;  %v2084_v44 = vmax.f32 %v2659_v36, 0.0  ;;  %v2233_v50 = vadd.f32 %v2232_v14, %v2163_v37  ;;  %v2167_v51 = vmul.f32 %v3301_v47, %v2081_v34 }
 0x1e5   :  { %v2169_v46 = vmul.f32 %v3293_v33, %v2083_v41  ;;  %v2168_v56 = vmul.f32 %v3309_v58, %v2082_v40  ;;  %2230 = vadd.xlane.f32.xlu0 %v2229_v49  ;;  %v2086_v0 = vmax.f32 %v2691_v45, 0.0  ;;  %v2171_v5 = vmul.f32 %v3301_v47, %v2085_v48  ;;  %v2277_v48 = vld [vmem:[#allocation2] sm:$0x1] }
 0x1e6   :  { %v2237_v52 = vadd.f32 %v2166_v43, %v2165_v39  ;;  %v2170_v53 = vmul.f32 %v3297_v38, %v2084_v44  ;;  %v1679_v54 = vpop.f32.mrb[20].mxu0  ;;  %v2018_v55 = vpop.f32.mrb[20].mxu1  ;;  %v2234_v62 = vadd.f32 %v2233_v50, %v2164_v42 }
 0x1e7   :  { %v2660_v57 = vadd.f32 %v1679_v54, %v3280_v25  ;;  %v2692_v59 = vadd.f32 %v2018_v55, %v3282_v26  ;;  %v1681_v60 = vpop.f32.mrb[21].mxu0  ;;  %v2020_v61 = vpop.f32.mrb[21].mxu1  ;;  %v2172_v22 = vmul.f32 %v3309_v58, %v2086_v0 }
 0x1e8   :  { %v2242_v63 = vadd.f32 %v2170_v53, %v2169_v46  ;;  %v2661_v1 = vadd.f32 %v1681_v60, %v3287_v28  ;;  %v1683_v2 = vpop.f32.mrb[22].mxu0  ;;  %v2022_v3 = vpop.f32.mrb[22].mxu1  ;;  %v2238_v4 = vadd.f32 %v2237_v52, %v2167_v51  ;;  %v2693_v16 = vadd.f32 %v2020_v61, %v3289_v29 }
 0x1e9   :  { %v2087_v6 = vmax.f32 %v2660_v57, 0.0  ;;  %v2662_v7 = vadd.f32 %v1683_v2, %v3280_v25  ;;  %v2694_v8 = vadd.f32 %v2022_v3, %v3282_v26  ;;  %v1685_v9 = vpop.f32.mrb[23].mxu0  ;;  %v2024_v10 = vpop.f32.mrb[23].mxu1  ;;  %v2089_v11 = vmax.f32 %v2692_v59, 0.0  ;;  %2235 = vadd.xlane.f32.xlu0 %v2234_v62 }
 0x1ea   :  { %v2088_v12 = vmax.f32 %v2661_v1, 0.0  ;;  %v2663_v13 = vadd.f32 %v1685_v9, %v3287_v28  ;;  %v2695_v14 = vadd.f32 %v2024_v10, %v3289_v29  ;;  %v2239_v32 = vadd.f32 %v2238_v4, %v2168_v56 }
 0x1eb   :  { %v2173_v15 = vmul.f32 %v3293_v33, %v2087_v6  ;;  %v2091_v17 = vmax.f32 %v2662_v7, 0.0  ;;  %v2093_v21 = vmax.f32 %v2694_v8, 0.0  ;;  %v2243_v34 = vadd.f32 %v2242_v63, %v2171_v5 }
 0x1ec   :  { %v2174_v23 = vmul.f32 %v3297_v38, %v2088_v12  ;;  %v2092_v24 = vmax.f32 %v2663_v13, 0.0  ;;  %v2094_v27 = vmax.f32 %v2695_v14, 0.0  ;;  %v2175_v35 = vmul.f32 %v3301_v47, %v2089_v11 }
 0x1ed   :  { %v2177_v30 = vmul.f32 %v3293_v33, %v2091_v17  ;;  %v2179_v31 = vmul.f32 %v3301_v47, %v2093_v21  ;;  %v2090_v42 = vmax.f32 %v2693_v16, 0.0  ;;  %2240 = vadd.xlane.f32.xlu0 %v2239_v32  ;;  %v2244_v49 = vadd.f32 %v2243_v34, %v2172_v22 }
 0x1ee   :  { %v2247_v36 = vadd.f32 %v2174_v23, %v2173_v15  ;;  %v2178_v37 = vmul.f32 %v3297_v38, %v2092_v24  ;;  %v2180_v39 = vmul.f32 %v3309_v58, %v2094_v27  ;;  %v1689_v40 = vpop.f32.mrb[24].mxu0  ;;  %v2028_v41 = vpop.f32.mrb[24].mxu1 }
 0x1ef   :  { %v2664_v43 = vadd.f32 %v1689_v40, %v3280_v25  ;;  %v2696_v44 = vadd.f32 %v2028_v41, %v3282_v26  ;;  %v1691_v45 = vpop.f32.mrb[25].mxu0  ;;  %v2030_v46 = vpop.f32.mrb[25].mxu1  ;;  %v2176_v0 = vmul.f32 %v3309_v58, %v2090_v42 }
 0x1f0   :  { %v2252_v50 = vadd.f32 %v2178_v37, %v2177_v30  ;;  %v2665_v51 = vadd.f32 %v1691_v45, %v3287_v28  ;;  %v1693_v52 = vpop.f32.mrb[26].mxu0  ;;  %v2032_v53 = vpop.f32.mrb[26].mxu1  ;;  %v2248_v54 = vadd.f32 %v2247_v36, %v2175_v35  ;;  %v2697_v62 = vadd.f32 %v2030_v46, %v3289_v29  ;;  %2280 = vperm.xlu1 %2840, %v2277_v48  }
 0x1f1   :  { %v2095_v55 = vmax.f32 %v2664_v43, 0.0  ;;  %v2666_v56 = vadd.f32 %v1693_v52, %v3280_v25  ;;  %v1695_v57 = vpop.f32.mrb[27].mxu0  ;;  %v2034_v59 = vpop.f32.mrb[27].mxu1  ;;  %v2097_v60 = vmax.f32 %v2696_v44, 0.0  ;;  %v2698_v3 = vadd.f32 %v2032_v53, %v3282_v26  ;;  %2245 = vadd.xlane.f32.xlu0 %v2244_v49 }
 0x1f2   :  { %v2096_v61 = vmax.f32 %v2665_v51, 0.0  ;;  %v2667_v63 = vadd.f32 %v1695_v57, %v3287_v28  ;;  %v2699_v7 = vadd.f32 %v2034_v59, %v3289_v29  ;;  %v2249_v8 = vadd.f32 %v2248_v54, %v2176_v0 }
 0x1f3   :  { %v2181_v1 = vmul.f32 %v3293_v33, %v2095_v55  ;;  %v2099_v2 = vmax.f32 %v2666_v56, 0.0  ;;  %v2253_v9 = vadd.f32 %v2252_v50, %v2179_v31  ;;  %v2183_v10 = vmul.f32 %v3301_v47, %v2097_v60 }
 0x1f4   :  { %v2182_v4 = vmul.f32 %v3297_v38, %v2096_v61  ;;  %v2100_v5 = vmax.f32 %v2667_v63, 0.0  ;;  %v2098_v12 = vmax.f32 %v2697_v62, 0.0  ;;  %v2101_v16 = vmax.f32 %v2698_v3, 0.0 }
 0x1f5   :  { %v2185_v6 = vmul.f32 %v3293_v33, %v2099_v2  ;;  %2250 = vadd.xlane.f32.xlu0 %v2249_v8  ;;  %v2254_v24 = vadd.f32 %v2253_v9, %v2180_v39  ;;  %v2102_v36 = vmax.f32 %v2699_v7, 0.0 }
 0x1f6   :  { %v2257_v11 = vadd.f32 %v2182_v4, %v2181_v1  ;;  %v2186_v13 = vmul.f32 %v3297_v38, %v2100_v5  ;;  %v1699_v14 = vpop.f32.mrb[28].mxu0  ;;  %v2038_v15 = vpop.f32.mrb[28].mxu1  ;;  %v2184_v48 = vmul.f32 %v3309_v58, %v2098_v12  ;;  %v2187_v49 = vmul.f32 %v3301_v47, %v2101_v16 }
 0x1f7   :  { %v2668_v17 = vadd.f32 %v1699_v14, %v3280_v25  ;;  %v2700_v21 = vadd.f32 %v2038_v15, %v3282_v26  ;;  %v1701_v22 = vpop.f32.mrb[29].mxu0  ;;  %v2040_v23 = vpop.f32.mrb[29].mxu1  ;;  %v2188_v54 = vmul.f32 %v3309_v58, %v2102_v36 }
 0x1f8   :  { %v2262_v27 = vadd.f32 %v2186_v13, %v2185_v6  ;;  %v2669_v30 = vadd.f32 %v1701_v22, %v3287_v28  ;;  %v2701_v31 = vadd.f32 %v2040_v23, %v3289_v29  ;;  %v1703_v32 = vpop.f32.mrb[30].mxu0  ;;  %v2042_v34 = vpop.f32.mrb[30].mxu1  ;;  %v2258_v35 = vadd.f32 %v2257_v11, %v2183_v10 }
 0x1f9   :  { %v2103_v37 = vmax.f32 %v2668_v17, 0.0  ;;  %v2670_v40 = vadd.f32 %v1703_v32, %v3280_v25  ;;  %v2702_v41 = vadd.f32 %v2042_v34, %v3282_v26  ;;  %v1705_v42 = vpop.f32.mrb[31].mxu0  ;;  %v2044_v43 = vpop.f32.mrb[31].mxu1  ;;  %v2105_v44 = vmax.f32 %v2700_v21, 0.0 }
 0x1fa   :  { %v2104_v45 = vmax.f32 %v2669_v30, 0.0  ;;  %v2671_v39 = vadd.f32 %v1705_v42, %v3287_v28  ;;  %v2703_v46 = vadd.f32 %v2044_v43, %v3289_v29  ;;  %v2106_v25 = vmax.f32 %v2701_v31, 0.0 }
 0x1fb   :  { %v2189_v50 = vmul.f32 %v3293_v33, %v2103_v37  ;;  %v2107_v51 = vmax.f32 %v2670_v40, 0.0  ;;  %v2109_v53 = vmax.f32 %v2702_v41, 0.0  ;;  %v2259_v56 = vadd.f32 %v2258_v35, %v2184_v48 }
 0x1fc   :  { %v2190_v52 = vmul.f32 %v3297_v38, %v2104_v45  ;;  %v2108_v26 = vmax.f32 %v2671_v39, 0.0  ;;  %v2263_v28 = vadd.f32 %v2262_v27, %v2187_v49  ;;  %v2191_v29 = vmul.f32 %v3301_v47, %v2105_v44 }
 0x1fd   :  { %v2193_v55 = vmul.f32 %v3293_v33, %v2107_v51  ;;  %v2110_v60 = vmax.f32 %v2703_v46, 0.0  ;;  %2260 = vadd.xlane.f32.xlu0 %v2259_v56  ;;  %v2192_v62 = vmul.f32 %v3309_v58, %v2106_v25  ;;  %v2195_v63 = vmul.f32 %v3301_v47, %v2109_v53 }
 0x1fe   :  { %v2267_v57 = vadd.f32 %v2190_v52, %v2189_v50  ;;  %v2194_v59 = vmul.f32 %v3297_v38, %v2108_v26  ;;  %v2264_v61 = vadd.f32 %v2263_v28, %v2188_v54  ;;  %v3429_v47 = vand.u32 127, %v389_v18 }
 0x1ff   :  { %v2196_v2 = vmul.f32 %v3309_v58, %v2110_v60 }
 0x200   :  { %v2272_v0 = vadd.f32 %v2194_v59, %v2193_v55  ;;  %v2268_v1 = vadd.f32 %v2267_v57, %v2191_v29  ;;  %v2325_v14 = vadd.s32 4294967288, %v3429_v47  ;;  %v2332_v15 = vadd.s32 4294967280, %v3429_v47 }
 0x201   :  { %2265 = vadd.xlane.f32.xlu0 %v2264_v61  ;;  %v2323_v22 = vsub.s32 %v3429_v47, %v3268_v19  ;;  %v2339_v30 = vadd.s32 4294967272, %v3429_v47  ;;  %v2346_v34 = vadd.s32 4294967264, %v3429_v47  ;;  %v2353_v41 = vadd.s32 4294967256, %v3429_v47 }
 0x202   :  { %v2269_v3 = vadd.f32 %v2268_v1, %v2192_v62  ;;  %v2273_v33 = vadd.f32 %v2272_v0, %v2195_v63  ;;  %v2328_v18 = vsub.s32 %v2325_v14, %v3268_v19  ;;  %v2360_v39 = vadd.s32 4294967248, %v3429_v47 }
 0x203   :  { %v2342_v37 = vsub.s32 %v2339_v30, %v3268_v19  ;;  %v2349_v44 = vsub.s32 %v2346_v34, %v3268_v19  ;;  %v2356_v49 = vsub.s32 %v2353_v41, %v3268_v19  ;;  %v2367_v52 = vadd.s32 4294967240, %v3429_v47 }
 0x204   :  { %v2274_v4 = vadd.f32 %v2273_v33, %v2196_v2  ;;  %v2363_v53 = vsub.s32 %v2360_v39, %v3268_v19  ;;  %v2374_v54 = vadd.s32 4294967232, %v3429_v47  ;;  %v2381_v56 = vadd.s32 4294967224, %v3429_v47 }
 0x205   :  { %2270 = vadd.xlane.f32.xlu0 %v2269_v3  ;;  %v2388_v28 = vadd.s32 4294967216, %v3429_v47  ;;  %v2370_v57 = vsub.s32 %v2367_v52, %v3268_v19  ;;  %v2395_v2 = vadd.s32 4294967208, %v3429_v47 }
 0x206   :  { %v2377_v61 = vsub.s32 %v2374_v54, %v3268_v19  ;;  %v2384_v0 = vsub.s32 %v2381_v56, %v3268_v19 }
 0x207   :  { %v2391_v33 = vsub.s32 %v2388_v28, %v3268_v19 }
 0x209   :  { %2275 = vadd.xlane.f32.xlu0 %v2274_v4 }
 0x214   :  { %2255 = vadd.xlane.f32.xlu1 %v2254_v24  ;;  %v2335_v24 = vsub.s32 %v2332_v15, %v3268_v19 }
 0x259   :  { %v2201_v5 = vpop.xlane.xlu0 %2200 }
 0x25d   :  { %v2206_v38 = vpop.xlane.xlu0 %2205 }
 0x262   :  { %v2211_v6 = vpop.xlane.xlu1 %2210 }
 0x266   :  { %v2216_v9 = vpop.xlane.xlu1 %2215 }
 0x26a   :  { %v2221_v7 = vpop.xlane.xlu0 %2220 }
 0x26c   :  { %v2226_v10 = vpop.xlane.xlu1 %2225 }
 0x270   :  { %v2281_v12 = vpop.permute.xlu1 %2280 }
 0x271   :  { %v3432_v13 = vrot.slane %v2281_v12, %v3271_v20  ;;  %v2398_v12 = vsub.s32 %v2395_v2, %v3268_v19 }
 0x272   :  { %v2231_v8 = vpop.xlane.xlu0 %2230 }
 0x273   :  { %v2287_v17 = vadd.f32 %v3432_v13, %v2201_v5  ;;  %v2288_v21 = vadd.f32 %v3432_v13, %v2206_v38  ;;  %v2289_v23 = vadd.f32 %v3432_v13, %v2211_v6  ;;  %v2290_v35 = vadd.f32 %v3432_v13, %v2216_v9 }
 0x274   :  { %v2291_v42 = vadd.f32 %v3432_v13, %v2221_v7  ;;  %v2292_v46 = vadd.f32 %v3432_v13, %v2226_v10  ;;  %v2293_v26 = vadd.f32 %v3432_v13, %v2231_v8  ;;  %v2402_v5 = vadd.s32 4294967200, %v3429_v47 }
 0x275   :  { %v2324_v20 = vrot.slane %v2287_v17, %v2323_v22  ;;  %v2329_v27 = vrot.slane %v2288_v21, %v2328_v18  ;;  %v2336_v32 = vrot.slane %v2289_v23, %v2335_v24  ;;  %v2343_v45 = vrot.slane %v2290_v35, %v2342_v37 }
 0x276   :  { %v2236_v11 = vpop.xlane.xlu0 %2235  ;;  %v2350_v50 = vrot.slane %v2291_v42, %v2349_v44  ;;  %v2357_v55 = vrot.slane %v2292_v46, %v2356_v49  ;;  %v2364_v60 = vrot.slane %v2293_v26, %v2363_v53  ;;  %v2409_v6 = vadd.s32 4294967192, %v3429_v47 }
 0x277   :  { %v2331_v36 = vsel %vm2330_vm0, %v2329_v27, %v2324_v20  ;;  %v2294_v59 = vadd.f32 %v3432_v13, %v2236_v11  ;;  %v2416_v7 = vadd.s32 4294967184, %v3429_v47  ;;  %v2423_v9 = vadd.s32 4294967176, %v3429_v47 }
 0x278   :  { %v2338_v43 = vsel %vm2337_vm1, %v2336_v32, %v2331_v36  ;;  %v2405_v14 = vsub.s32 %v2402_v5, %v3268_v19  ;;  %v2412_v21 = vsub.s32 %v2409_v6, %v3268_v19 }
 0x279   :  { %v2345_v48 = vsel %vm2344_vm2, %v2343_v45, %v2338_v43  ;;  %v2371_v38 = vrot.slane %v2294_v59, %v2370_v57  ;;  %v2419_v18 = vsub.s32 %v2416_v7, %v3268_v19  ;;  %v2426_v20 = vsub.s32 %v2423_v9, %v3268_v19 }
 0x27a   :  { %v2241_v58 = vpop.xlane.xlu0 %2240  ;;  %v2352_v25 = vsel %vm2351_vm3, %v2350_v50, %v2345_v48 }
 0x27b   :  { %v2359_v29 = vsel %vm2358_vm4, %v2357_v55, %v2352_v25  ;;  %v2295_v62 = vadd.f32 %v3432_v13, %v2241_v58 }
 0x27c   :  { %v2366_v3 = vsel %vm2365_vm5, %v2364_v60, %v2359_v29 }
 0x27d   :  { %v2378_v8 = vrot.slane %v2295_v62, %v2377_v61  ;;  %v2373_v10 = vsel %vm2372_vm6, %v2371_v38, %v2366_v3 }
 0x27e   :  { %v2246_v16 = vpop.xlane.xlu0 %2245 }
 0x27f   :  { %v2296_v1 = vadd.f32 %v3432_v13, %v2246_v16  ;;  %v2380_v23 = vsel %vm2379_vm7, %v2378_v8, %v2373_v10 }
 0x281   :  { %v2385_v11 = vrot.slane %v2296_v1, %v2384_v0 }
 0x282   :  { %v2251_v31 = vpop.xlane.xlu0 %2250 }
 0x283   :  { %v2297_v4 = vadd.f32 %v3432_v13, %v2251_v31  ;;  %v2387_v27 = vsel %vm2386_vm8, %v2385_v11, %v2380_v23 }
 0x285   :  { %v2392_v58 = vrot.slane %v2297_v4, %v2391_v33 }
 0x287   :  { %v2394_v32 = vsel %vm2393_vm9, %v2392_v58, %v2387_v27 }
 0x28a   :  { %v2261_v40 = vpop.xlane.xlu0 %2260 }
 0x28b   :  { %v2299_v15 = vadd.f32 %v3432_v13, %v2261_v40 }
 0x28d   :  { %v2406_v34 = vrot.slane %v2299_v15, %v2405_v14 }
 0x28e   :  { %v2266_v51 = vpop.xlane.xlu0 %2265 }
 0x28f   :  { %v2300_v22 = vadd.f32 %v3432_v13, %v2266_v51 }
 0x291   :  { %v2413_v35 = vrot.slane %v2300_v22, %v2412_v21 }
 0x292   :  { %v2271_v63 = vpop.xlane.xlu0 %2270 }
 0x293   :  { %v2301_v24 = vadd.f32 %v3432_v13, %v2271_v63 }
 0x295   :  { %v2420_v37 = vrot.slane %v2301_v24, %v2419_v18 }
 0x296   :  { %v2276_v16 = vpop.xlane.xlu0 %2275 }
 0x297   :  { %v2302_v30 = vadd.f32 %v3432_v13, %v2276_v16 }
 0x299   :  { %v2427_v19 = vrot.slane %v2302_v30, %v2426_v20 }
 0x2a1   :  { %v2256_v17 = vpop.xlane.xlu1 %2255 }
 0x2a2   :  { %v2298_v47 = vadd.f32 %v3432_v13, %v2256_v17 }
 0x2a4   :  { %v2399_v31 = vrot.slane %v2298_v47, %v2398_v12 }
 0x2a6   :  { %v2401_v36 = vsel %vm2400_vm10, %v2399_v31, %v2394_v32 }
 0x2a7   :  { %v2408_v40 = vsel %vm2407_vm11, %v2406_v34, %v2401_v36 }
 0x2a8   :  { %v2415_v41 = vsel %vm2414_vm12, %v2413_v35, %v2408_v40 }
 0x2a9   :  { %v2422_v42 = vsel %vm2421_vm13, %v2420_v37, %v2415_v41 }
 0x2aa   :  { %v2429_v43 = vsel %vm2428_vm14, %v2427_v19, %v2422_v42 }
 0x2ab   :  { %2431 = vst [vmem:[#allocation8] sm:$0x1] %v2429_v43 }
 0x2ac   :  { %3185 = shalt.err (!%p3182_p6)
}
 0x2ad   :  { %s3186_s28 = scalar_lea.hbm %s3502_s5, 16 }
 0x2ae   :  { %p3187_p7 = scmp.ne.s32.totalorder %s3502_s5, %s3186_s28  ;;  %p3190_p8 = scmp.lt.u32.totalorder %s3186_s28, %s3502_s5 }
 0x2b0   :  { %p3192_p9 = pnand %p3190_p8, %p3187_p7 }
 0x2b2   :  { %3195 = shalt.err (!%p3192_p9)
}
 0x2b3   :  { %2441 = dma.vmem_to_hbm [thread:$0]  %s2439_s3, 16, %s3502_s5, [#allocation5]  }
 0x2b4   :  { %3200 = dma.done.wait [#allocation5], 16  }
 0x2b5   :  { %3201 = vsyncadd [#allocation5], 4294967280 }
 0x2b6   :  { %2445 = vsyncpa [#allocation4], 1 }
 0x2b7   :  { %2446 = vsyncpa [#allocation7], 1 }
 0x2b8   :  { %2447 = vsyncpa [#allocation5], 1 }

</bundles_post_ra>
